<compile_context>
chip_gen: v5e
topology: v5e:2x2
jax: 0.10.0
libtpu: 0.0.40
codegen_flags: <defaults>
</compile_context>

<pallas_src>
import functools

import jax
import jax.numpy as jnp
from jax import lax
from jax.experimental import pallas as pl
from jax.experimental.pallas import tpu as pltpu


# ------------------------------ fused kernel --------------------------------


def _fused_inverted_residual_kernel(*refs, stride, th, h, w, wout, hidden,
                                    use_res, has_expand):
    """One grid step = (image n, output-row band b).

    refs (in order):
      x_ref                    (1, H*W, Cin)          flattened NHWC input
      [w_exp_ref, b_exp_ref]   (Cin, hidden),(1,hidden)  only if has_expand
      w_dw_ref, b_dw_ref       (9, hidden), (1, hidden)
      w_proj_ref, b_proj_ref   (hidden, Cout), (1, Cout)
      o_ref                    (1, th*Wout, Cout)
      hid_ref (VMEM scratch)   (H+2, W+2, hidden)     zero-padded hidden act
    """
    if has_expand:
        (x_ref, w_exp_ref, b_exp_ref, w_dw_ref, b_dw_ref,
         w_proj_ref, b_proj_ref, o_ref, hid_ref) = refs
    else:
        (x_ref, w_dw_ref, b_dw_ref, w_proj_ref, b_proj_ref,
         o_ref, hid_ref) = refs

    s = stride
    band = pl.program_id(1)

    # ---- stage 1 (once per image): 1x1 expand + BN + ReLU6 into padded VMEM
    @pl.when(band == 0)
    def _():
        xv = x_ref[0].astype(jnp.float32)                     # (H*W, Cin)
        if has_expand:
            hid = jnp.dot(xv, w_exp_ref[...].astype(jnp.float32),
                          preferred_element_type=jnp.float32)
            hid = jnp.clip(hid + b_exp_ref[...].astype(jnp.float32), 0.0, 6.0)
        else:
            hid = xv
        hid_ref[...] = jnp.zeros_like(hid_ref)                # zero halo border
        hid_ref[1:h + 1, 1:w + 1, :] = hid.reshape(h, w, hidden)

    # ---- stage 2: 3x3 depthwise + BN + ReLU6 for this band (VMEM resident)
    r0 = pl.multiple_of(band * (th * s), th * s)              # first padded row of band
    w9 = w_dw_ref[...].astype(jnp.float32)                    # (9, hidden), loaded once
    acc = jnp.broadcast_to(b_dw_ref[...].astype(jnp.float32), (th, wout, hidden))
    if s == 1:
        for ky in range(3):
            rows = hid_ref[pl.ds(r0 + ky, th), :, :]          # (th, W+2, hidden)
            for kx in range(3):
                acc = acc + rows[:, kx:kx + wout, :] * w9[ky * 3 + kx]
    else:
        for ky in range(3):
            # stride-2 row/column subsampling hoisted out of the kx loop:
            # strided ref loads give even/odd column phases of the needed rows.
            ph = (hid_ref[pl.ds(r0 + ky, th, 2), pl.ds(0, wout + 1, 2), :],
                  hid_ref[pl.ds(r0 + ky, th, 2), pl.ds(1, wout, 2), :])
            for kx in range(3):
                c0 = kx // 2
                acc = acc + ph[kx % 2][:, c0:c0 + wout, :] * w9[ky * 3 + kx]
    dw = jnp.clip(acc, 0.0, 6.0)                              # (th, Wout, hidden)

    # ---- stage 3: 1x1 projection + BN (+ residual) and store
    out = jnp.dot(dw.reshape(th * wout, hidden),
                  w_proj_ref[...].astype(jnp.float32),
                  preferred_element_type=jnp.float32)
    out = out + b_proj_ref[...].astype(jnp.float32)
    if use_res:
        roff = pl.multiple_of(band * (th * wout), th * wout)
        out = out + x_ref[0, pl.ds(roff, th * wout), :].astype(jnp.float32)
    o_ref[0] = out.astype(o_ref.dtype)


# ------------------------------ wrapper --------------------------------------


def _pick_band_rows(hout, target):
    th = min(target, hout)
    while hout % th:
        th -= 1
    return th


def inverted_residual_forward(x_nchw, params, *, inp, oup, stride, expand_ratio,
                              band_rows=8):
    """Fused Pallas forward. Input/output in NCHW (PyTorch convention)."""
    assert stride in (1, 2)
    N, cin, H, W = x_nchw.shape
    assert cin == inp
    use_res = (stride == 1) and (inp == oup)
    has_expand = expand_ratio != 1
    hidden = int(round(inp * expand_ratio))
    Hout = (H + 2 - 3) // stride + 1
    Wout = (W + 2 - 3) // stride + 1
    th = _pick_band_rows(Hout, band_rows)
    nb = Hout // th

    # NCHW -> NHWC -> flatten spatial (free reshape outside the kernel).
    x2 = jnp.transpose(x_nchw, (0, 2, 3, 1)).reshape(N, H * W, inp)
    w_dw9 = params["w_dw"].reshape(9, hidden)
    row = lambda v: v.reshape(1, -1)
    const2 = lambda shape: pl.BlockSpec(shape, lambda n, b: (0, 0))

    args = [x2]
    in_specs = [pl.BlockSpec((1, H * W, inp), lambda n, b: (n, 0, 0))]
    if has_expand:
        args += [params["w_expand"], row(params["b_expand"])]
        in_specs += [const2((inp, hidden)), const2((1, hidden))]
    args += [w_dw9, row(params["b_dw"]), params["w_proj"], row(params["b_proj"])]
    in_specs += [const2((9, hidden)), const2((1, hidden)),
                 const2((hidden, oup)), const2((1, oup))]

    kernel = functools.partial(
        _fused_inverted_residual_kernel,
        stride=stride, th=th, h=H, w=W, wout=Wout, hidden=hidden,
        use_res=use_res, has_expand=has_expand)

    out = pl.pallas_call(
        kernel,
        out_shape=jax.ShapeDtypeStruct((N, Hout * Wout, oup), x_nchw.dtype),
        grid_spec=pltpu.PrefetchScalarGridSpec(
            num_scalar_prefetch=0,
            grid=(N, nb),
            in_specs=in_specs,
            out_specs=pl.BlockSpec((1, th * Wout, oup), lambda n, b: (n, b, 0)),
            scratch_shapes=[pltpu.VMEM((H + 2, W + 2, hidden), jnp.float32)],
        ),
        compiler_params=pltpu.CompilerParams(
            dimension_semantics=("parallel", "arbitrary")),
    )(*args)

    out = out.reshape(N, Hout, Wout, oup)
    return jnp.transpose(out, (0, 3, 1, 2))  # -> NCHW


# -------------------------- parameter construction --------------------------


def _fold_bn(gamma, beta, mean, var, eps=1e-5):
    scale = gamma / jnp.sqrt(var + eps)
    bias = beta - mean * scale
    return scale, bias


def make_inverted_residual_params(key, inp, oup, expand_ratio):
    """Deterministic synthetic params; BN folded into conv weights/bias."""
    hidden = int(round(inp * expand_ratio))
    keys = jax.random.split(key, 16)
    p = {}

    def bn_params(k0, k1, k2, k3, c):
        gamma = 1.0 + 0.1 * jax.random.normal(k0, (c,), jnp.float32)
        beta = 0.1 * jax.random.normal(k1, (c,), jnp.float32)
        mean = 0.1 * jax.random.normal(k2, (c,), jnp.float32)
        var = 0.5 + 0.5 * jnp.abs(jax.random.normal(k3, (c,), jnp.float32))
        return _fold_bn(gamma, beta, mean, var)

    if expand_ratio != 1:
        w1 = 0.1 * jax.random.normal(keys[0], (inp, hidden), jnp.float32)
        s1, b1 = bn_params(keys[1], keys[2], keys[3], keys[4], hidden)
        p["w_expand"] = w1 * s1[None, :]
        p["b_expand"] = b1

    wd = 0.1 * jax.random.normal(keys[5], (3, 3, hidden), jnp.float32)
    sd, bd = bn_params(keys[6], keys[7], keys[8], keys[9], hidden)
    p["w_dw"] = wd * sd[None, None, :]
    p["b_dw"] = bd

    w2 = 0.1 * jax.random.normal(keys[10], (hidden, oup), jnp.float32)
    s2, b2 = bn_params(keys[11], keys[12], keys[13], keys[14], oup)
    p["w_proj"] = w2 * s2[None, :]
    p["b_proj"] = b2
    return p, hidden


# ------------------------------ pure-JAX reference ---------------------------


def reference_forward(x_nchw, params, *, inp, oup, stride, expand_ratio):
    use_res = (stride == 1) and (inp == oup)
    dn = ("NHWC", "HWIO", "NHWC")
    x = jnp.transpose(x_nchw, (0, 2, 3, 1))
    h = x
    if expand_ratio != 1:
        h = lax.conv_general_dilated(h, params["w_expand"][None, None], (1, 1),
                                     "VALID", dimension_numbers=dn)
        h = jnp.clip(h + params["b_expand"], 0.0, 6.0)
    c = params["w_dw"].shape[-1]
    h = lax.conv_general_dilated(h, params["w_dw"][:, :, None, :], (stride, stride),
                                 ((1, 1), (1, 1)), dimension_numbers=dn,
                                 feature_group_count=c)
    h = jnp.clip(h + params["b_dw"], 0.0, 6.0)
    h = lax.conv_general_dilated(h, params["w_proj"][None, None], (1, 1),
                                 "VALID", dimension_numbers=dn) + params["b_proj"]
    if use_res:
        h = h + x
    return jnp.transpose(h, (0, 3, 1, 2))


# ------------------------------------ main -----------------------------------


if __name__ == "__main__":
    key = jax.random.PRNGKey(0)
    configs = [
        # (N, inp, oup, H, W, stride, expand_ratio, band_rows)
        dict(N=2, inp=8, oup=8, H=16, W=16, stride=1, expand_ratio=6, band_rows=8),
        dict(N=2, inp=8, oup=16, H=16, W=16, stride=2, expand_ratio=6, band_rows=4),
        dict(N=2, inp=16, oup=16, H=16, W=16, stride=1, expand_ratio=1, band_rows=8),
    ]

    for cfg in configs:
        key, k_x, k_p = jax.random.split(key, 3)
        N, inp, oup = cfg["N"], cfg["inp"], cfg["oup"]
        H, W = cfg["H"], cfg["W"]
        stride, er = cfg["stride"], cfg["expand_ratio"]

        x = jax.random.normal(k_x, (N, inp, H, W), jnp.float32)  # NCHW
        params, hidden = make_inverted_residual_params(k_p, inp, oup, er)

        out = inverted_residual_forward(x, params, inp=inp, oup=oup,
                                        stride=stride, expand_ratio=er,
                                        band_rows=cfg["band_rows"])
        out = jax.block_until_ready(out)

        ref = reference_forward(x, params, inp=inp, oup=oup,
                                stride=stride, expand_ratio=er)
        ref = jax.block_until_ready(ref)

        Hout = (H + 2 - 3) // stride + 1
        Wout = (W + 2 - 3) // stride + 1
        assert out.shape == (N, oup, Hout, Wout), out.shape
        err = float(jnp.abs(out - ref).max())
        assert jnp.allclose(out, ref, rtol=2e-4, atol=2e-4), (cfg, err)

    print("KERNEL_OK")
</pallas_src>

<mosaic_0001>
module attributes {stable_mosaic.version = 11 : i64} {
  func.func @_fused_inverted_residual_kernel(%arg0: i32, %arg1: i32, %arg2: memref<1x256x8xf32, #tpu.memory_space<vmem>>, %arg3: memref<8x48xf32, #tpu.memory_space<vmem>>, %arg4: memref<1x48xf32, #tpu.memory_space<vmem>>, %arg5: memref<9x48xf32, #tpu.memory_space<vmem>>, %arg6: memref<1x48xf32, #tpu.memory_space<vmem>>, %arg7: memref<48x8xf32, #tpu.memory_space<vmem>>, %arg8: memref<1x8xf32, #tpu.memory_space<vmem>>, %arg9: memref<1x128x8xf32, #tpu.memory_space<vmem>>, %arg10: memref<18x18x48xf32, #tpu.memory_space<vmem>>) attributes {dimension_semantics = [#tpu.dimension_semantics<parallel>, #tpu.dimension_semantics<arbitrary>], iteration_bounds = array<i64: 2, 2>, scalar_prefetch = 0 : i64, scratch_operands = 1 : i64, tpu.core_type = #tpu.core_type<tc>, window_params = [{transform_indices = @transform_0, window_bounds = array<i64: 1, 256, 8>}, {pipeline_mode = #tpu.pipeline_mode<synchronous>, transform_indices = @transform_1, window_bounds = array<i64: 8, 48>}, {pipeline_mode = #tpu.pipeline_mode<synchronous>, transform_indices = @transform_2, window_bounds = array<i64: 1, 48>}, {pipeline_mode = #tpu.pipeline_mode<synchronous>, transform_indices = @transform_3, window_bounds = array<i64: 9, 48>}, {pipeline_mode = #tpu.pipeline_mode<synchronous>, transform_indices = @transform_4, window_bounds = array<i64: 1, 48>}, {pipeline_mode = #tpu.pipeline_mode<synchronous>, transform_indices = @transform_5, window_bounds = array<i64: 48, 8>}, {pipeline_mode = #tpu.pipeline_mode<synchronous>, transform_indices = @transform_6, window_bounds = array<i64: 1, 8>}, {transform_indices = @transform_7, window_bounds = array<i64: 1, 128, 8>}]} {
    %c0_i32 = arith.constant 0 : i32
    %0 = arith.cmpi eq, %arg1, %c0_i32 : i32
    %1 = arith.extui %0 : i1 to i32
    %c0_i32_0 = arith.constant 0 : i32
    %2 = arith.cmpi ne, %1, %c0_i32_0 : i32
    scf.if %2 {
      %c0_22 = arith.constant 0 : index
      %c0_23 = arith.constant 0 : index
      %c0_24 = arith.constant 0 : index
      %100 = vector.load %arg2[%c0_22, %c0_23, %c0_24] : memref<1x256x8xf32, #tpu.memory_space<vmem>>, vector<1x256x8xf32>
      %101 = vector.shape_cast %100 : vector<1x256x8xf32> to vector<256x8xf32>
      %c0_25 = arith.constant 0 : index
      %c0_26 = arith.constant 0 : index
      %102 = vector.load %arg3[%c0_25, %c0_26] : memref<8x48xf32, #tpu.memory_space<vmem>>, vector<8x48xf32>
      %cst_27 = arith.constant dense<0.000000e+00> : vector<256x48xf32>
      %103 = tpu.matmul %101, %102, %cst_27 {dimension_numbers = #tpu.dot_dimension_numbers<[1], [0], [0], [1], [0, 0, 1, 1], [], []>} : vector<256x8xf32>, vector<8x48xf32>, vector<256x48xf32> -> vector<256x48xf32>
      %c0_28 = arith.constant 0 : index
      %c0_29 = arith.constant 0 : index
      %104 = vector.load %arg4[%c0_28, %c0_29] : memref<1x48xf32, #tpu.memory_space<vmem>>, vector<1x48xf32>
      %105 = vector.broadcast %104 : vector<1x48xf32> to vector<256x48xf32>
      %106 = arith.addf %103, %105 : vector<256x48xf32>
      %cst_30 = arith.constant 0.000000e+00 : f32
      %cst_31 = arith.constant 6.000000e+00 : f32
      %107 = vector.broadcast %cst_30 : f32 to vector<256x48xf32>
      %108 = arith.maximumf %107, %106 : vector<256x48xf32>
      %109 = vector.broadcast %cst_31 : f32 to vector<256x48xf32>
      %110 = arith.minimumf %109, %108 : vector<256x48xf32>
      %cst_32 = arith.constant 0.000000e+00 : f32
      %111 = vector.broadcast %cst_32 : f32 to vector<18x18x48xf32>
      %c0_33 = arith.constant 0 : index
      %c0_34 = arith.constant 0 : index
      %c0_35 = arith.constant 0 : index
      %112 = vector.load %arg10[%c0_33, %c0_34, %c0_35] : memref<18x18x48xf32, #tpu.memory_space<vmem>>, vector<18x18x48xf32>
      tpu.vector_store %arg10[%c0_33, %c0_34, %c0_35], %111 {strides = array<i32>} : memref<18x18x48xf32, #tpu.memory_space<vmem>>, vector<18x18x48xf32>,
      %113 = vector.shape_cast %110 : vector<256x48xf32> to vector<16x16x48xf32>
      %c1 = arith.constant 1 : index
      %c1_36 = arith.constant 1 : index
      %c0_37 = arith.constant 0 : index
      %114 = vector.load %arg10[%c1, %c1_36, %c0_37] : memref<18x18x48xf32, #tpu.memory_space<vmem>>, vector<16x16x48xf32>
      tpu.vector_store %arg10[%c1, %c1_36, %c0_37], %113 {strides = array<i32>} : memref<18x18x48xf32, #tpu.memory_space<vmem>>, vector<16x16x48xf32>,
    } else {
    }
    %c8_i32 = arith.constant 8 : i32
    %3 = arith.muli %arg1, %c8_i32 : i32
    %4 = tpu.assume_multiple %3, 8 : i32
    %c0 = arith.constant 0 : index
    %c0_1 = arith.constant 0 : index
    %5 = vector.load %arg5[%c0, %c0_1] : memref<9x48xf32, #tpu.memory_space<vmem>>, vector<9x48xf32>
    %c0_2 = arith.constant 0 : index
    %c0_3 = arith.constant 0 : index
    %6 = vector.load %arg6[%c0_2, %c0_3] : memref<1x48xf32, #tpu.memory_space<vmem>>, vector<1x48xf32>
    %7 = vector.shape_cast %6 : vector<1x48xf32> to vector<1x1x48xf32>
    %8 = vector.broadcast %7 : vector<1x1x48xf32> to vector<8x16x48xf32>
    %c0_i32_4 = arith.constant 0 : i32
    %9 = arith.addi %4, %c0_i32_4 : i32
    %10 = arith.index_cast %9 : i32 to index
    %c0_5 = arith.constant 0 : index
    %c0_6 = arith.constant 0 : index
    %11 = vector.load %arg10[%10, %c0_5, %c0_6] : memref<18x18x48xf32, #tpu.memory_space<vmem>>, vector<8x18x48xf32>
    %12 = vector.extract_strided_slice %11 {offsets = [0, 0, 0], sizes = [8, 16, 48], strides = [1, 1, 1]} : vector<8x18x48xf32> to vector<8x16x48xf32>
    %13 = vector.extract_strided_slice %5 {offsets = [0, 0], sizes = [1, 48], strides = [1, 1]} : vector<9x48xf32> to vector<1x48xf32>
    %14 = vector.shape_cast %13 : vector<1x48xf32> to vector<48xf32>
    %15 = vector.shape_cast %14 : vector<48xf32> to vector<1x1x48xf32>
    %16 = vector.broadcast %15 : vector<1x1x48xf32> to vector<8x16x48xf32>
    %17 = arith.mulf %12, %16 : vector<8x16x48xf32>
    %18 = arith.addf %8, %17 : vector<8x16x48xf32>
    %19 = vector.extract_strided_slice %11 {offsets = [0, 1, 0], sizes = [8, 16, 48], strides = [1, 1, 1]} : vector<8x18x48xf32> to vector<8x16x48xf32>
    %20 = vector.extract_strided_slice %5 {offsets = [1, 0], sizes = [1, 48], strides = [1, 1]} : vector<9x48xf32> to vector<1x48xf32>
    %21 = vector.shape_cast %20 : vector<1x48xf32> to vector<48xf32>
    %22 = vector.shape_cast %21 : vector<48xf32> to vector<1x1x48xf32>
    %23 = vector.broadcast %22 : vector<1x1x48xf32> to vector<8x16x48xf32>
    %24 = arith.mulf %19, %23 : vector<8x16x48xf32>
    %25 = arith.addf %18, %24 : vector<8x16x48xf32>
    %26 = vector.extract_strided_slice %11 {offsets = [0, 2, 0], sizes = [8, 16, 48], strides = [1, 1, 1]} : vector<8x18x48xf32> to vector<8x16x48xf32>
    %27 = vector.extract_strided_slice %5 {offsets = [2, 0], sizes = [1, 48], strides = [1, 1]} : vector<9x48xf32> to vector<1x48xf32>
    %28 = vector.shape_cast %27 : vector<1x48xf32> to vector<48xf32>
    %29 = vector.shape_cast %28 : vector<48xf32> to vector<1x1x48xf32>
    %30 = vector.broadcast %29 : vector<1x1x48xf32> to vector<8x16x48xf32>
    %31 = arith.mulf %26, %30 : vector<8x16x48xf32>
    %32 = arith.addf %25, %31 : vector<8x16x48xf32>
    %c1_i32 = arith.constant 1 : i32
    %33 = arith.addi %4, %c1_i32 : i32
    %34 = arith.index_cast %33 : i32 to index
    %c0_7 = arith.constant 0 : index
    %c0_8 = arith.constant 0 : index
    %35 = vector.load %arg10[%34, %c0_7, %c0_8] : memref<18x18x48xf32, #tpu.memory_space<vmem>>, vector<8x18x48xf32>
    %36 = vector.extract_strided_slice %35 {offsets = [0, 0, 0], sizes = [8, 16, 48], strides = [1, 1, 1]} : vector<8x18x48xf32> to vector<8x16x48xf32>
    %37 = vector.extract_strided_slice %5 {offsets = [3, 0], sizes = [1, 48], strides = [1, 1]} : vector<9x48xf32> to vector<1x48xf32>
    %38 = vector.shape_cast %37 : vector<1x48xf32> to vector<48xf32>
    %39 = vector.shape_cast %38 : vector<48xf32> to vector<1x1x48xf32>
    %40 = vector.broadcast %39 : vector<1x1x48xf32> to vector<8x16x48xf32>
    %41 = arith.mulf %36, %40 : vector<8x16x48xf32>
    %42 = arith.addf %32, %41 : vector<8x16x48xf32>
    %43 = vector.extract_strided_slice %35 {offsets = [0, 1, 0], sizes = [8, 16, 48], strides = [1, 1, 1]} : vector<8x18x48xf32> to vector<8x16x48xf32>
    %44 = vector.extract_strided_slice %5 {offsets = [4, 0], sizes = [1, 48], strides = [1, 1]} : vector<9x48xf32> to vector<1x48xf32>
    %45 = vector.shape_cast %44 : vector<1x48xf32> to vector<48xf32>
    %46 = vector.shape_cast %45 : vector<48xf32> to vector<1x1x48xf32>
    %47 = vector.broadcast %46 : vector<1x1x48xf32> to vector<8x16x48xf32>
    %48 = arith.mulf %43, %47 : vector<8x16x48xf32>
    %49 = arith.addf %42, %48 : vector<8x16x48xf32>
    %50 = vector.extract_strided_slice %35 {offsets = [0, 2, 0], sizes = [8, 16, 48], strides = [1, 1, 1]} : vector<8x18x48xf32> to vector<8x16x48xf32>
    %51 = vector.extract_strided_slice %5 {offsets = [5, 0], sizes = [1, 48], strides = [1, 1]} : vector<9x48xf32> to vector<1x48xf32>
    %52 = vector.shape_cast %51 : vector<1x48xf32> to vector<48xf32>
    %53 = vector.shape_cast %52 : vector<48xf32> to vector<1x1x48xf32>
    %54 = vector.broadcast %53 : vector<1x1x48xf32> to vector<8x16x48xf32>
    %55 = arith.mulf %50, %54 : vector<8x16x48xf32>
    %56 = arith.addf %49, %55 : vector<8x16x48xf32>
    %c2_i32 = arith.constant 2 : i32
    %57 = arith.addi %4, %c2_i32 : i32
    %58 = arith.index_cast %57 : i32 to index
    %c0_9 = arith.constant 0 : index
    %c0_10 = arith.constant 0 : index
    %59 = vector.load %arg10[%58, %c0_9, %c0_10] : memref<18x18x48xf32, #tpu.memory_space<vmem>>, vector<8x18x48xf32>
    %60 = vector.extract_strided_slice %59 {offsets = [0, 0, 0], sizes = [8, 16, 48], strides = [1, 1, 1]} : vector<8x18x48xf32> to vector<8x16x48xf32>
    %61 = vector.extract_strided_slice %5 {offsets = [6, 0], sizes = [1, 48], strides = [1, 1]} : vector<9x48xf32> to vector<1x48xf32>
    %62 = vector.shape_cast %61 : vector<1x48xf32> to vector<48xf32>
    %63 = vector.shape_cast %62 : vector<48xf32> to vector<1x1x48xf32>
    %64 = vector.broadcast %63 : vector<1x1x48xf32> to vector<8x16x48xf32>
    %65 = arith.mulf %60, %64 : vector<8x16x48xf32>
    %66 = arith.addf %56, %65 : vector<8x16x48xf32>
    %67 = vector.extract_strided_slice %59 {offsets = [0, 1, 0], sizes = [8, 16, 48], strides = [1, 1, 1]} : vector<8x18x48xf32> to vector<8x16x48xf32>
    %68 = vector.extract_strided_slice %5 {offsets = [7, 0], sizes = [1, 48], strides = [1, 1]} : vector<9x48xf32> to vector<1x48xf32>
    %69 = vector.shape_cast %68 : vector<1x48xf32> to vector<48xf32>
    %70 = vector.shape_cast %69 : vector<48xf32> to vector<1x1x48xf32>
    %71 = vector.broadcast %70 : vector<1x1x48xf32> to vector<8x16x48xf32>
    %72 = arith.mulf %67, %71 : vector<8x16x48xf32>
    %73 = arith.addf %66, %72 : vector<8x16x48xf32>
    %74 = vector.extract_strided_slice %59 {offsets = [0, 2, 0], sizes = [8, 16, 48], strides = [1, 1, 1]} : vector<8x18x48xf32> to vector<8x16x48xf32>
    %75 = vector.extract_strided_slice %5 {offsets = [8, 0], sizes = [1, 48], strides = [1, 1]} : vector<9x48xf32> to vector<1x48xf32>
    %76 = vector.shape_cast %75 : vector<1x48xf32> to vector<48xf32>
    %77 = vector.shape_cast %76 : vector<48xf32> to vector<1x1x48xf32>
    %78 = vector.broadcast %77 : vector<1x1x48xf32> to vector<8x16x48xf32>
    %79 = arith.mulf %74, %78 : vector<8x16x48xf32>
    %80 = arith.addf %73, %79 : vector<8x16x48xf32>
    %cst = arith.constant 0.000000e+00 : f32
    %cst_11 = arith.constant 6.000000e+00 : f32
    %81 = vector.broadcast %cst : f32 to vector<8x16x48xf32>
    %82 = arith.maximumf %81, %80 : vector<8x16x48xf32>
    %83 = vector.broadcast %cst_11 : f32 to vector<8x16x48xf32>
    %84 = arith.minimumf %83, %82 : vector<8x16x48xf32>
    %85 = vector.shape_cast %84 : vector<8x16x48xf32> to vector<128x48xf32>
    %c0_12 = arith.constant 0 : index
    %c0_13 = arith.constant 0 : index
    %86 = vector.load %arg7[%c0_12, %c0_13] : memref<48x8xf32, #tpu.memory_space<vmem>>, vector<48x8xf32>
    %cst_14 = arith.constant dense<0.000000e+00> : vector<128x8xf32>
    %87 = tpu.matmul %85, %86, %cst_14 {dimension_numbers = #tpu.dot_dimension_numbers<[1], [0], [0], [1], [0, 0, 1, 1], [], []>} : vector<128x48xf32>, vector<48x8xf32>, vector<128x8xf32> -> vector<128x8xf32>
    %c0_15 = arith.constant 0 : index
    %c0_16 = arith.constant 0 : index
    %88 = vector.load %arg8[%c0_15, %c0_16] : memref<1x8xf32, #tpu.memory_space<vmem>>, vector<1x8xf32>
    %89 = vector.broadcast %88 : vector<1x8xf32> to vector<128x8xf32>
    %90 = arith.addf %87, %89 : vector<128x8xf32>
    %c128_i32 = arith.constant 128 : i32
    %91 = arith.muli %arg1, %c128_i32 : i32
    %92 = tpu.assume_multiple %91, 128 : i32
    %c0_17 = arith.constant 0 : index
    %93 = arith.index_cast %92 : i32 to index
    %c0_18 = arith.constant 0 : index
    %94 = vector.load %arg2[%c0_17, %93, %c0_18] : memref<1x256x8xf32, #tpu.memory_space<vmem>>, vector<1x128x8xf32>
    %95 = vector.shape_cast %94 : vector<1x128x8xf32> to vector<128x8xf32>
    %96 = arith.addf %90, %95 : vector<128x8xf32>
    %c0_19 = arith.constant 0 : index
    %c0_20 = arith.constant 0 : index
    %c0_21 = arith.constant 0 : index
    %97 = vector.load %arg9[%c0_19, %c0_20, %c0_21] : memref<1x128x8xf32, #tpu.memory_space<vmem>>, vector<1x128x8xf32>
    %98 = vector.shape_cast %97 : vector<1x128x8xf32> to vector<128x8xf32>
    %99 = vector.shape_cast %96 : vector<128x8xf32> to vector<1x128x8xf32>
    tpu.vector_store %arg9[%c0_19, %c0_20, %c0_21], %99 {strides = array<i32>} : memref<1x128x8xf32, #tpu.memory_space<vmem>>, vector<1x128x8xf32>,
    return
  }
  func.func @transform_0(%arg0: i32, %arg1: i32) -> (i32, i32, i32) {
    %c0_i32 = arith.constant 0 : i32
    %c0_i32_0 = arith.constant 0 : i32
    %c0_i32_1 = arith.constant 0 : i32
    return %arg0, %c0_i32, %c0_i32_0 : i32, i32, i32
  }
  func.func @transform_1(%arg0: i32, %arg1: i32) -> (i32, i32) {
    %c0_i32 = arith.constant 0 : i32
    %c0_i32_0 = arith.constant 0 : i32
    %c0_i32_1 = arith.constant 0 : i32
    return %c0_i32, %c0_i32_0 : i32, i32
  }
  func.func @transform_2(%arg0: i32, %arg1: i32) -> (i32, i32) {
    %c0_i32 = arith.constant 0 : i32
    %c0_i32_0 = arith.constant 0 : i32
    %c0_i32_1 = arith.constant 0 : i32
    return %c0_i32, %c0_i32_0 : i32, i32
  }
  func.func @transform_3(%arg0: i32, %arg1: i32) -> (i32, i32) {
    %c0_i32 = arith.constant 0 : i32
    %c0_i32_0 = arith.constant 0 : i32
    %c0_i32_1 = arith.constant 0 : i32
    return %c0_i32, %c0_i32_0 : i32, i32
  }
  func.func @transform_4(%arg0: i32, %arg1: i32) -> (i32, i32) {
    %c0_i32 = arith.constant 0 : i32
    %c0_i32_0 = arith.constant 0 : i32
    %c0_i32_1 = arith.constant 0 : i32
    return %c0_i32, %c0_i32_0 : i32, i32
  }
  func.func @transform_5(%arg0: i32, %arg1: i32) -> (i32, i32) {
    %c0_i32 = arith.constant 0 : i32
    %c0_i32_0 = arith.constant 0 : i32
    %c0_i32_1 = arith.constant 0 : i32
    return %c0_i32, %c0_i32_0 : i32, i32
  }
  func.func @transform_6(%arg0: i32, %arg1: i32) -> (i32, i32) {
    %c0_i32 = arith.constant 0 : i32
    %c0_i32_0 = arith.constant 0 : i32
    %c0_i32_1 = arith.constant 0 : i32
    return %c0_i32, %c0_i32_0 : i32, i32
  }
  func.func @transform_7(%arg0: i32, %arg1: i32) -> (i32, i32, i32) {
    %c0_i32 = arith.constant 0 : i32
    %c0_i32_0 = arith.constant 0 : i32
    return %arg0, %arg1, %c0_i32 : i32, i32, i32
  }
}

</mosaic_0001>

<bundles_post_ra>
// kernel: tpu_custom_call.1
= control target key start
LH: loop header
LB: loop body
LE: loop exit
PB: predicated region body
PF: predicated region fallthrough
CT: control target
= control target key end

     0   :  { %s2191_s24 = smov 0   ;;  %s2193_s25 = smov 0   ;;  %s3503_s0 = inlined_call_operand.vmem [shape: f32[2,256,8], index: 0, kind: input, shape index: {}]   ;;  %s3504_s1 = inlined_call_operand.vmem [shape: f32[8,48], index: 1, kind: input, shape index: {}]   ;;  %s3505_s2 = inlined_call_operand.vmem [shape: f32[1,48], index: 2, kind: input, shape index: {}]   ;;  %s3506_s3 = inlined_call_operand.vmem [shape: f32[9,48], index: 3, kind: input, shape index: {}]   ;;  %s3507_s4 = inlined_call_operand.vmem [shape: f32[1,48], index: 4, kind: input, shape index: {}]   ;;  %s3508_s5 = inlined_call_operand.vmem [shape: f32[48,8], index: 5, kind: input, shape index: {}]   ;;  %s3509_s6 = inlined_call_operand.vmem [shape: f32[1,8], index: 6, kind: input, shape index: {}]   ;;  %s3510_s7 = inlined_call_operand.vmem [shape: f32[2,256,8], index: 7, kind: output, shape index: {}]  }
   0x1   :  { %s2195_s26 = smov 0   ;;  %s2197_s27 = smov 0  }
   0x2   :  { %s2199_s28 = smov 0  }
   0x3 LB: > { %s26_s29 = sadd.s32 1, %s2140_s26  ;;  %s29_s30 = sadd.s32 1, %s2144_s27  ;;  %s2148_s28 = sphi %s2199_s28, %s17_s28   ;;  %s2144_s27 = sphi %s2197_s27, %s3660_s27   ;;  %s2140_s26 = sphi %s2195_s26, %s3659_s26   ;;  %s2136_s25 = sphi %s2193_s25, %s3658_s25   ;;  %s2132_s24 = sphi %s2191_s24, %s3657_s24  }
   0x4   : > { %p27_p0 = scmp.ge.s32.totalorder %s26_s29, 2  ;;  %p1927_p1 = scmp.ge.s32.totalorder %s2148_s28, 1 }
   0x5   : > { %p251_p2 = scmp.lt.s32.totalorder %s2148_s28, 5 }
   0x6   : > { %s3662_s29 = smov (%p27_p0, %s26_s29), 0  ;;  %s3664_s30 = smov (!%p27_p0, %s29_s30), %s2144_s27 }
   0x7   : > { %p252_p3 = pnand %p1927_p1, %p251_p2  ;;  %p31_p4 = scmp.ge.s32.totalorder %s3664_s30, 2 }
   0x9   : > { %s3666_s30 = smov (%p31_p4, %s3664_s30), 0  ;;  %255 = sbr.rel (%p252_p3) target bundleno = 537 (0x219), region = 48 }
   0xe   : > { %p287_p5 = scmp.lt.s32.totalorder %s2136_s25, 1  ;;  %s1930_s8 = sshll.u32 %s2132_s24, 4 }
   0xf   : > { %p295_p6 = scmp.lt.s32.totalorder %s1930_s8, 31  ;;  %p1933_p7 = scmp.ne.s32.totalorder %s2132_s24, 0 }
  0x10   : > { %s3668_s25 = smov (!%p287_p5, %s2136_s25), 1 }
  0x11   : > { %s3670_s8 = smov (!%p295_p6, %s1930_s8), 31  ;;  %s2039_s9 = sshll.u32 %s3668_s25, 8 }
  0x12   : > { %s1931_s10 = sshll.u32 %s3668_s25, 5  ;;  %s2227_s13 = scalar_lea.vmem %s3503_s0, %s2039_s9 }
  0x13   : > { %s298_s14 = sadd.s32 %s1931_s10, %s3670_s8  ;;  %305 = sbr.rel (%p1933_p7) target bundleno = 222 (0xde), region = 52 }
  0x14   : > { %s1932_s15 = sshll.u32 %s298_s14, 3 }
  0x15   : > { %s2232_s18 = scalar_lea.vmem %s3510_s7, %s1932_s15 }
  0x18   : > { %v338_v0 = vld [vmem:[%s3504_s1] sm:$0xff]  ;;  %vm343_vm0 = vcmask 64512   ;;  %v323_v5 = vld [vmem:[%s2227_s13 + $0x88] sm:$0xff]  ;;  %v324_v9 = vld [vmem:[%s2227_s13 + $0x90] sm:$0xff]  ;;  %vm617_vm1 = vcmask 392192   ;;  %v2150_v33 = vmov 0.0  }
  0x19   : > { %v322_v1 = vld [vmem:[%s2227_s13 + $0x80] sm:$0xff]  ;;  %2041 = vmatpush.msra.mxu2 %v338_v0  ;;  %2042 = vmatpush.msra.mxu3 %v338_v0  ;;  %v331_v6 = vld [vmem:[%s2227_s13 + $0xc8] sm:$0xff]  ;;  %v332_v10 = vld [vmem:[%s2227_s13 + $0xd0] sm:$0xff]  ;;  %622 = vst.msk [vmem:[#allocation2 + $0x18] sm:$0xff] %vm617_vm1, %v2150_v33  ;;  %vm620_vm2 = vcmask 386048  }
  0x1a   : > { %v330_v2 = vld [vmem:[%s2227_s13 + $0xc0] sm:$0xff]  ;;  %1950 = vmatmul.msk.f32.vlgmr.msra.gmra.mxu2 %vm343_vm0, %v322_v1  ;;  %455 = vmatpush.msra.mxu0 %v338_v0  ;;  %v307_v7 = vld [vmem:[%s2227_s13 + $0x8] sm:$0xff]  ;;  %v308_v11 = vld [vmem:[%s2227_s13 + $0x10] sm:$0xff]  ;;  %623 = vst.msk [vmem:[#allocation2 + $0x20] sm:$0xff] %vm617_vm1, %v2150_v33 }
  0x1b   : > { %v306_v3 = vld [vmem:[%s2227_s13] sm:$0xff]  ;;  %1958 = vmatmul.msk.f32.vlgmr.msra.gmra.mxu3 %vm343_vm0, %v330_v2  ;;  %2040 = vmatpush.msra.mxu1 %v338_v0  ;;  %v315_v8 = vld [vmem:[%s2227_s13 + $0x48] sm:$0xff]  ;;  %v316_v12 = vld [vmem:[%s2227_s13 + $0x50] sm:$0xff]  ;;  %618 = vst.msk [vmem:[#allocation2] sm:$0xff] %vm617_vm1, %v2150_v33 }
  0x1c   : > { %v314_v4 = vld [vmem:[%s2227_s13 + $0x40] sm:$0xff]  ;;  %1934 = vmatmul.msk.f32.vlgmr.msra.gmra.mxu0 %vm343_vm0, %v306_v3  ;;  %v325_v13 = vld [vmem:[%s2227_s13 + $0x98] sm:$0xff]  ;;  %v327_v21 = vld [vmem:[%s2227_s13 + $0xa8] sm:$0xff]  ;;  %619 = vst.msk [vmem:[#allocation2 + $0x8] sm:$0xff] %vm617_vm1, %v2150_v33 }
  0x1d   : > { %1942 = vmatmul.msk.f32.vlgmr.msra.gmra.mxu1 %vm343_vm0, %v314_v4  ;;  %v333_v14 = vld [vmem:[%s2227_s13 + $0xd8] sm:$0xff]  ;;  %v326_v17 = vld [vmem:[%s2227_s13 + $0xa0] sm:$0xff]  ;;  %v335_v22 = vld [vmem:[%s2227_s13 + $0xe8] sm:$0xff]  ;;  %625 = vst.msk [vmem:[#allocation2 + $0x30] sm:$0xff] %vm617_vm1, %v2150_v33 }
  0x1e   : > { %v309_v15 = vld [vmem:[%s2227_s13 + $0x18] sm:$0xff]  ;;  %v334_v18 = vld [vmem:[%s2227_s13 + $0xe0] sm:$0xff]  ;;  %v311_v23 = vld [vmem:[%s2227_s13 + $0x28] sm:$0xff]  ;;  %626 = vst.msk [vmem:[#allocation2 + $0x38] sm:$0xff] %vm617_vm1, %v2150_v33 }
  0x1f   : > { %v317_v16 = vld [vmem:[%s2227_s13 + $0x58] sm:$0xff]  ;;  %v310_v19 = vld [vmem:[%s2227_s13 + $0x20] sm:$0xff]  ;;  %v319_v24 = vld [vmem:[%s2227_s13 + $0x68] sm:$0xff]  ;;  %628 = vst.msk [vmem:[#allocation2 + $0x48] sm:$0xff] %vm617_vm1, %v2150_v33 }
  0x20   : > { %v318_v20 = vld [vmem:[%s2227_s13 + $0x60] sm:$0xff]  ;;  %v328_v25 = vld [vmem:[%s2227_s13 + $0xb0] sm:$0xff]  ;;  %v329_v29 = vld [vmem:[%s2227_s13 + $0xb8] sm:$0xff]  ;;  %629 = vst.msk [vmem:[#allocation2 + $0x50] sm:$0xff] %vm617_vm1, %v2150_v33 }
  0x21   : > { %v336_v26 = vld [vmem:[%s2227_s13 + $0xf0] sm:$0xff]  ;;  %v337_v30 = vld [vmem:[%s2227_s13 + $0xf8] sm:$0xff]  ;;  %631 = vst.msk [vmem:[#allocation2 + $0x60] sm:$0xff] %vm617_vm1, %v2150_v33  ;;  %v2351_v34 = vld [vmem:[%s3505_s2] ss:$0 sm:$0xff] }
  0x22   : > { %1951 = vmatmul.msk.f32.gmra.mxu2 %vm343_vm0, %v323_v5  ;;  %v312_v27 = vld [vmem:[%s2227_s13 + $0x30] sm:$0xff]  ;;  %v313_v31 = vld [vmem:[%s2227_s13 + $0x38] sm:$0xff]  ;;  %632 = vst.msk [vmem:[#allocation2 + $0x68] sm:$0xff] %vm617_vm1, %v2150_v33 }
  0x23   : > { %1959 = vmatmul.msk.f32.gmra.mxu3 %vm343_vm0, %v331_v6  ;;  %v320_v28 = vld [vmem:[%s2227_s13 + $0x70] sm:$0xff]  ;;  %v321_v32 = vld [vmem:[%s2227_s13 + $0x78] sm:$0xff]  ;;  %634 = vst.msk [vmem:[#allocation2 + $0x78] sm:$0xff] %vm617_vm1, %v2150_v33 }
  0x24   : > { %1935 = vmatmul.msk.f32.gmra.mxu0 %vm343_vm0, %v307_v7  ;;  %635 = vst.msk [vmem:[#allocation2 + $0x80] sm:$0xff] %vm617_vm1, %v2150_v33 }
  0x25   : > { %1943 = vmatmul.msk.f32.gmra.mxu1 %vm343_vm0, %v315_v8  ;;  %637 = vst.msk [vmem:[#allocation2 + $0x90] sm:$0xff] %vm617_vm1, %v2150_v33 }
  0x26   : > { %638 = vst.msk [vmem:[#allocation2 + $0x98] sm:$0xff] %vm617_vm1, %v2150_v33 }
  0x27   : > { %640 = vst.msk [vmem:[#allocation2 + $0xa8] sm:$0xff] %vm617_vm1, %v2150_v33 }
  0x28   : > { %641 = vst.msk [vmem:[#allocation2 + $0xb0] sm:$0xff] %vm617_vm1, %v2150_v33 }
  0x29   : > { %643 = vst.msk [vmem:[#allocation2 + $0xc0] sm:$0xff] %vm617_vm1, %v2150_v33 }
  0x2a   : > { %1952 = vmatmul.msk.f32.gmra.mxu2 %vm343_vm0, %v324_v9  ;;  %644 = vst.msk [vmem:[#allocation2 + $0xc8] sm:$0xff] %vm617_vm1, %v2150_v33 }
  0x2b   : > { %1960 = vmatmul.msk.f32.gmra.mxu3 %vm343_vm0, %v332_v10  ;;  %646 = vst.msk [vmem:[#allocation2 + $0xd8] sm:$0xff] %vm617_vm1, %v2150_v33 }
  0x2c   : > { %1936 = vmatmul.msk.f32.gmra.mxu0 %vm343_vm0, %v308_v11  ;;  %647 = vst.msk [vmem:[#allocation2 + $0xe0] sm:$0xff] %vm617_vm1, %v2150_v33 }
  0x2d   : > { %1944 = vmatmul.msk.f32.gmra.mxu1 %vm343_vm0, %v316_v12  ;;  %649 = vst.msk [vmem:[#allocation2 + $0xf0] sm:$0xff] %vm617_vm1, %v2150_v33 }
  0x2e   : > { %650 = vst.msk [vmem:[#allocation2 + $0xf8] sm:$0xff] %vm617_vm1, %v2150_v33 }
  0x2f   : > { %652 = vst.msk [vmem:[#allocation2 + $0x108] sm:$0xff] %vm617_vm1, %v2150_v33 }
  0x30   : > { %653 = vst.msk [vmem:[#allocation2 + $0x110] sm:$0xff] %vm617_vm1, %v2150_v33 }
  0x31   : > { %655 = vst.msk [vmem:[#allocation2 + $0x120] sm:$0xff] %vm617_vm1, %v2150_v33 }
  0x32   : > { %1953 = vmatmul.msk.f32.gmra.mxu2 %vm343_vm0, %v325_v13  ;;  %656 = vst.msk [vmem:[#allocation2 + $0x128] sm:$0xff] %vm617_vm1, %v2150_v33 }
  0x33   : > { %1961 = vmatmul.msk.f32.gmra.mxu3 %vm343_vm0, %v333_v14  ;;  %658 = vst.msk [vmem:[#allocation2 + $0x138] sm:$0xff] %vm617_vm1, %v2150_v33 }
  0x34   : > { %1937 = vmatmul.msk.f32.gmra.mxu0 %vm343_vm0, %v309_v15  ;;  %659 = vst.msk [vmem:[#allocation2 + $0x140] sm:$0xff] %vm617_vm1, %v2150_v33 }
  0x35   : > { %1945 = vmatmul.msk.f32.gmra.mxu1 %vm343_vm0, %v317_v16  ;;  %661 = vst.msk [vmem:[#allocation2 + $0x150] sm:$0xff] %vm617_vm1, %v2150_v33 }
  0x36   : > { %662 = vst.msk [vmem:[#allocation2 + $0x158] sm:$0xff] %vm617_vm1, %v2150_v33 }
  0x37   : > { %664 = vst.msk [vmem:[#allocation2 + $0x168] sm:$0xff] %vm617_vm1, %v2150_v33 }
  0x38   : > { %665 = vst.msk [vmem:[#allocation2 + $0x170] sm:$0xff] %vm617_vm1, %v2150_v33 }
  0x39   : > { %667 = vst.msk [vmem:[#allocation2 + $0x180] sm:$0xff] %vm617_vm1, %v2150_v33 }
  0x3a   : > { %1954 = vmatmul.msk.f32.gmra.mxu2 %vm343_vm0, %v326_v17  ;;  %668 = vst.msk [vmem:[#allocation2 + $0x188] sm:$0xff] %vm617_vm1, %v2150_v33 }
  0x3b   : > { %1962 = vmatmul.msk.f32.gmra.mxu3 %vm343_vm0, %v334_v18  ;;  %670 = vst.msk [vmem:[#allocation2 + $0x198] sm:$0xff] %vm617_vm1, %v2150_v33 }
  0x3c   : > { %1938 = vmatmul.msk.f32.gmra.mxu0 %vm343_vm0, %v310_v19  ;;  %671 = vst.msk [vmem:[#allocation2 + $0x1a0] sm:$0xff] %vm617_vm1, %v2150_v33 }
  0x3d   : > { %1946 = vmatmul.msk.f32.gmra.mxu1 %vm343_vm0, %v318_v20  ;;  %621 = vst.msk [vmem:[#allocation2 + $0x10] sm:$0x3] %vm620_vm2, %v2150_v33 }
  0x3e   : > { %624 = vst.msk [vmem:[#allocation2 + $0x28] sm:$0x3] %vm620_vm2, %v2150_v33 }
  0x3f   : > { %672 = vst.msk [vmem:[#allocation2 + $0x1a8] sm:$0x3] %vm620_vm2, %v2150_v33 }
  0x40   : > { %627 = vst.msk [vmem:[#allocation2 + $0x40] sm:$0x3] %vm620_vm2, %v2150_v33 }
  0x41   : > { %630 = vst.msk [vmem:[#allocation2 + $0x58] sm:$0x3] %vm620_vm2, %v2150_v33 }
  0x42   : > { %1955 = vmatmul.msk.f32.gmra.mxu2 %vm343_vm0, %v327_v21  ;;  %633 = vst.msk [vmem:[#allocation2 + $0x70] sm:$0x3] %vm620_vm2, %v2150_v33 }
  0x43   : > { %1963 = vmatmul.msk.f32.gmra.mxu3 %vm343_vm0, %v335_v22  ;;  %636 = vst.msk [vmem:[#allocation2 + $0x88] sm:$0x3] %vm620_vm2, %v2150_v33 }
  0x44   : > { %1939 = vmatmul.msk.f32.gmra.mxu0 %vm343_vm0, %v311_v23  ;;  %639 = vst.msk [vmem:[#allocation2 + $0xa0] sm:$0x3] %vm620_vm2, %v2150_v33 }
  0x45   : > { %1947 = vmatmul.msk.f32.gmra.mxu1 %vm343_vm0, %v319_v24  ;;  %642 = vst.msk [vmem:[#allocation2 + $0xb8] sm:$0x3] %vm620_vm2, %v2150_v33 }
  0x46   : > { %645 = vst.msk [vmem:[#allocation2 + $0xd0] sm:$0x3] %vm620_vm2, %v2150_v33 }
  0x47   : > { %648 = vst.msk [vmem:[#allocation2 + $0xe8] sm:$0x3] %vm620_vm2, %v2150_v33 }
  0x48   : > { %651 = vst.msk [vmem:[#allocation2 + $0x100] sm:$0x3] %vm620_vm2, %v2150_v33 }
  0x49   : > { %654 = vst.msk [vmem:[#allocation2 + $0x118] sm:$0x3] %vm620_vm2, %v2150_v33 }
  0x4a   : > { %1956 = vmatmul.msk.f32.gmra.mxu2 %vm343_vm0, %v328_v25  ;;  %657 = vst.msk [vmem:[#allocation2 + $0x130] sm:$0x3] %vm620_vm2, %v2150_v33 }
  0x4b   : > { %1964 = vmatmul.msk.f32.gmra.mxu3 %vm343_vm0, %v336_v26  ;;  %660 = vst.msk [vmem:[#allocation2 + $0x148] sm:$0x3] %vm620_vm2, %v2150_v33 }
  0x4c   : > { %1940 = vmatmul.msk.f32.gmra.mxu0 %vm343_vm0, %v312_v27  ;;  %663 = vst.msk [vmem:[#allocation2 + $0x160] sm:$0x3] %vm620_vm2, %v2150_v33 }
  0x4d   : > { %1948 = vmatmul.msk.f32.gmra.mxu1 %vm343_vm0, %v320_v28  ;;  %666 = vst.msk [vmem:[#allocation2 + $0x178] sm:$0x3] %vm620_vm2, %v2150_v33 }
  0x4e   : > { %669 = vst.msk [vmem:[#allocation2 + $0x190] sm:$0x3] %vm620_vm2, %v2150_v33 }
  0x52   : > { %1957 = vmatmul.msk.f32.gmra.mxu2 %vm343_vm0, %v329_v29 }
  0x53   : > { %1965 = vmatmul.msk.f32.gmra.mxu3 %vm343_vm0, %v337_v30 }
  0x54   : > { %1941 = vmatmul.msk.f32.gmra.mxu0 %vm343_vm0, %v313_v31 }
  0x55   : > { %1949 = vmatmul.msk.f32.gmra.mxu1 %vm343_vm0, %v321_v32 }
  0x99   : > { %v457_v35 = vpop.f32.mrf.mxu0 }
  0x9a   : > { %v481_v36 = vpop.f32.mrf.mxu1  ;;  %v458_v37 = vadd.f32 %v2351_v34, %v457_v35 }
  0x9b   : > { %v482_v38 = vadd.f32 %v2351_v34, %v481_v36 }
  0x9c   : > { %v553_v39 = vmax.f32 %v458_v37, 0.0 }
  0x9d   : > { %v561_v40 = vmax.f32 %v482_v38, 0.0  ;;  %v505_v41 = vpop.f32.mrf.mxu2 }
  0x9e   : > { %v529_v42 = vpop.f32.mrf.mxu3  ;;  %v585_v43 = vmin.f32 %v553_v39, 6.0  ;;  %v506_v44 = vadd.f32 %v2351_v34, %v505_v41 }
  0x9f   : > { %v530_v45 = vadd.f32 %v2351_v34, %v529_v42  ;;  %v593_v46 = vmin.f32 %v561_v40, 6.0 }
  0xa0   : > { %674 = vst.msk [vmem:[#allocation2 + $0x19] sm:$0xff] %vm617_vm1, %v585_v43  ;;  %v569_v47 = vmax.f32 %v506_v44, 0.0 }
  0xa1   : > { %v577_v48 = vmax.f32 %v530_v45, 0.0  ;;  %v460_v49 = vpop.f32.mrf.mxu0  ;;  %682 = vst.msk [vmem:[#allocation2 + $0x79] sm:$0xff] %vm617_vm1, %v593_v46 }
  0xa2   : > { %v484_v50 = vpop.f32.mrf.mxu1  ;;  %v601_v51 = vmin.f32 %v569_v47, 6.0  ;;  %v461_v53 = vadd.f32 %v2351_v34, %v460_v49 }
  0xa3   : > { %v609_v52 = vmin.f32 %v577_v48, 6.0  ;;  %v485_v62 = vadd.f32 %v2351_v34, %v484_v50 }
  0xa4   : > { %v554_v54 = vmax.f32 %v461_v53, 0.0  ;;  %690 = vst.msk [vmem:[#allocation2 + $0xd9] sm:$0xff] %vm617_vm1, %v601_v51 }
  0xa5   : > { %v508_v55 = vpop.f32.mrf.mxu2  ;;  %698 = vst.msk [vmem:[#allocation2 + $0x139] sm:$0xff] %vm617_vm1, %v609_v52  ;;  %v562_v4 = vmax.f32 %v485_v62, 0.0 }
  0xa6   : > { %v532_v56 = vpop.f32.mrf.mxu3  ;;  %v586_v57 = vmin.f32 %v554_v54, 6.0  ;;  %v509_v63 = vadd.f32 %v2351_v34, %v508_v55 }
  0xa7   : > { %v533_v0 = vadd.f32 %v2351_v34, %v532_v56  ;;  %v594_v14 = vmin.f32 %v562_v4, 6.0 }
  0xa8   : > { %675 = vst.msk [vmem:[#allocation2 + $0x21] sm:$0xff] %vm617_vm1, %v586_v57  ;;  %v570_v6 = vmax.f32 %v509_v63, 0.0 }
  0xa9   : > { %v463_v58 = vpop.f32.mrf.mxu0  ;;  %v578_v8 = vmax.f32 %v533_v0, 0.0  ;;  %683 = vst.msk [vmem:[#allocation2 + $0x81] sm:$0xff] %vm617_vm1, %v594_v14 }
  0xaa   : > { %v487_v59 = vpop.f32.mrf.mxu1  ;;  %v464_v1 = vadd.f32 %v2351_v34, %v463_v58  ;;  %v602_v17 = vmin.f32 %v570_v6, 6.0 }
  0xab   : > { %v488_v5 = vadd.f32 %v2351_v34, %v487_v59  ;;  %v610_v20 = vmin.f32 %v578_v8, 6.0 }
  0xac   : > { %v555_v10 = vmax.f32 %v464_v1, 0.0  ;;  %691 = vst.msk [vmem:[#allocation2 + $0xe1] sm:$0xff] %vm617_vm1, %v602_v17 }
  0xad   : > { %v511_v60 = vpop.f32.mrf.mxu2  ;;  %v563_v15 = vmax.f32 %v488_v5, 0.0  ;;  %699 = vst.msk [vmem:[#allocation2 + $0x141] sm:$0xff] %vm617_vm1, %v610_v20 }
  0xae   : > { %v535_v61 = vpop.f32.mrf.mxu3  ;;  %v512_v7 = vadd.f32 %v2351_v34, %v511_v60  ;;  %v587_v23 = vmin.f32 %v555_v10, 6.0 }
  0xaf   : > { %v536_v9 = vadd.f32 %v2351_v34, %v535_v61  ;;  %v595_v27 = vmin.f32 %v563_v15, 6.0 }
  0xb0   : > { %v571_v18 = vmax.f32 %v512_v7, 0.0  ;;  %676 = vst.msk [vmem:[#allocation2 + $0x31] sm:$0xff] %vm617_vm1, %v587_v23 }
  0xb1   : > { %v466_v2 = vpop.f32.mrf.mxu0  ;;  %v579_v21 = vmax.f32 %v536_v9, 0.0  ;;  %684 = vst.msk [vmem:[#allocation2 + $0x91] sm:$0xff] %vm617_vm1, %v595_v27 }
  0xb2   : > { %v490_v3 = vpop.f32.mrf.mxu1  ;;  %v467_v11 = vadd.f32 %v2351_v34, %v466_v2  ;;  %v603_v31 = vmin.f32 %v571_v18, 6.0 }
  0xb3   : > { %v491_v16 = vadd.f32 %v2351_v34, %v490_v3  ;;  %v611_v35 = vmin.f32 %v579_v21, 6.0 }
  0xb4   : > { %v556_v24 = vmax.f32 %v467_v11, 0.0  ;;  %692 = vst.msk [vmem:[#allocation2 + $0xf1] sm:$0xff] %vm617_vm1, %v603_v31 }
  0xb5   : > { %v514_v12 = vpop.f32.mrf.mxu2  ;;  %v564_v28 = vmax.f32 %v491_v16, 0.0  ;;  %700 = vst.msk [vmem:[#allocation2 + $0x151] sm:$0xff] %vm617_vm1, %v611_v35 }
  0xb6   : > { %v538_v13 = vpop.f32.mrf.mxu3  ;;  %v515_v19 = vadd.f32 %v2351_v34, %v514_v12  ;;  %v588_v36 = vmin.f32 %v556_v24, 6.0 }
  0xb7   : > { %v539_v22 = vadd.f32 %v2351_v34, %v538_v13  ;;  %v596_v40 = vmin.f32 %v564_v28, 6.0 }
  0xb8   : > { %v572_v32 = vmax.f32 %v515_v19, 0.0  ;;  %677 = vst.msk [vmem:[#allocation2 + $0x39] sm:$0xff] %vm617_vm1, %v588_v36 }
  0xb9   : > { %v469_v25 = vpop.f32.mrf.mxu0  ;;  %v580_v33 = vmax.f32 %v539_v22, 0.0  ;;  %685 = vst.msk [vmem:[#allocation2 + $0x99] sm:$0xff] %vm617_vm1, %v596_v40 }
  0xba   : > { %v493_v26 = vpop.f32.mrf.mxu1  ;;  %v470_v29 = vadd.f32 %v2351_v34, %v469_v25  ;;  %v604_v44 = vmin.f32 %v572_v32, 6.0 }
  0xbb   : > { %v494_v30 = vadd.f32 %v2351_v34, %v493_v26  ;;  %v612_v45 = vmin.f32 %v580_v33, 6.0 }
  0xbc   : > { %v557_v37 = vmax.f32 %v470_v29, 0.0  ;;  %693 = vst.msk [vmem:[#allocation2 + $0xf9] sm:$0xff] %vm617_vm1, %v604_v44 }
  0xbd   : > { %v517_v38 = vpop.f32.mrf.mxu2  ;;  %v565_v41 = vmax.f32 %v494_v30, 0.0  ;;  %701 = vst.msk [vmem:[#allocation2 + $0x159] sm:$0xff] %vm617_vm1, %v612_v45 }
  0xbe   : > { %v541_v39 = vpop.f32.mrf.mxu3  ;;  %v518_v42 = vadd.f32 %v2351_v34, %v517_v38  ;;  %v589_v48 = vmin.f32 %v557_v37, 6.0 }
  0xbf   : > { %v542_v43 = vadd.f32 %v2351_v34, %v541_v39  ;;  %v597_v51 = vmin.f32 %v565_v41, 6.0 }
  0xc0   : > { %v573_v46 = vmax.f32 %v518_v42, 0.0  ;;  %678 = vst.msk [vmem:[#allocation2 + $0x49] sm:$0xff] %vm617_vm1, %v589_v48 }
  0xc1   : > { %v581_v47 = vmax.f32 %v542_v43, 0.0  ;;  %v472_v49 = vpop.f32.mrf.mxu0  ;;  %686 = vst.msk [vmem:[#allocation2 + $0xa9] sm:$0xff] %vm617_vm1, %v597_v51 }
  0xc2   : > { %v496_v50 = vpop.f32.mrf.mxu1  ;;  %v473_v52 = vadd.f32 %v2351_v34, %v472_v49  ;;  %v605_v54 = vmin.f32 %v573_v46, 6.0 }
  0xc3   : > { %v497_v53 = vadd.f32 %v2351_v34, %v496_v50  ;;  %v613_v55 = vmin.f32 %v581_v47, 6.0 }
  0xc4   : > { %v558_v56 = vmax.f32 %v473_v52, 0.0  ;;  %694 = vst.msk [vmem:[#allocation2 + $0x109] sm:$0xff] %vm617_vm1, %v605_v54 }
  0xc5   : > { %v566_v57 = vmax.f32 %v497_v53, 0.0  ;;  %v520_v58 = vpop.f32.mrf.mxu2  ;;  %702 = vst.msk [vmem:[#allocation2 + $0x169] sm:$0xff] %vm617_vm1, %v613_v55 }
  0xc6   : > { %v544_v59 = vpop.f32.mrf.mxu3  ;;  %v590_v60 = vmin.f32 %v558_v56, 6.0  ;;  %v521_v62 = vadd.f32 %v2351_v34, %v520_v58 }
  0xc7   : > { %v598_v61 = vmin.f32 %v566_v57, 6.0  ;;  %v545_v63 = vadd.f32 %v2351_v34, %v544_v59 }
  0xc8   : > { %v574_v0 = vmax.f32 %v521_v62, 0.0  ;;  %679 = vst.msk [vmem:[#allocation2 + $0x51] sm:$0xff] %vm617_vm1, %v590_v60 }
  0xc9   : > { %v582_v1 = vmax.f32 %v545_v63, 0.0  ;;  %v475_v2 = vpop.f32.mrf.mxu0  ;;  %687 = vst.msk [vmem:[#allocation2 + $0xb1] sm:$0xff] %vm617_vm1, %v598_v61 }
  0xca   : > { %v499_v3 = vpop.f32.mrf.mxu1  ;;  %v606_v4 = vmin.f32 %v574_v0, 6.0  ;;  %v476_v6 = vadd.f32 %v2351_v34, %v475_v2 }
  0xcb   : > { %v614_v5 = vmin.f32 %v582_v1, 6.0  ;;  %v500_v7 = vadd.f32 %v2351_v34, %v499_v3 }
  0xcc   : > { %695 = vst.msk [vmem:[#allocation2 + $0x111] sm:$0xff] %vm617_vm1, %v606_v4  ;;  %v559_v8 = vmax.f32 %v476_v6, 0.0 }
  0xcd   : > { %v567_v9 = vmax.f32 %v500_v7, 0.0  ;;  %703 = vst.msk [vmem:[#allocation2 + $0x171] sm:$0xff] %vm617_vm1, %v614_v5  ;;  %v523_v10 = vpop.f32.mrf.mxu2 }
  0xce   : > { %v547_v11 = vpop.f32.mrf.mxu3  ;;  %v591_v12 = vmin.f32 %v559_v8, 6.0  ;;  %v524_v14 = vadd.f32 %v2351_v34, %v523_v10 }
  0xcf   : > { %v599_v13 = vmin.f32 %v567_v9, 6.0  ;;  %v548_v15 = vadd.f32 %v2351_v34, %v547_v11 }
  0xd0   : > { %680 = vst.msk [vmem:[#allocation2 + $0x61] sm:$0xff] %vm617_vm1, %v591_v12  ;;  %v575_v16 = vmax.f32 %v524_v14, 0.0 }
  0xd1   : > { %v583_v17 = vmax.f32 %v548_v15, 0.0  ;;  %688 = vst.msk [vmem:[#allocation2 + $0xc1] sm:$0xff] %vm617_vm1, %v599_v13  ;;  %v478_v18 = vpop.f32.mrf.mxu0 }
  0xd2   : > { %v502_v19 = vpop.f32.mrf.mxu1  ;;  %v607_v20 = vmin.f32 %v575_v16, 6.0  ;;  %v479_v22 = vadd.f32 %v2351_v34, %v478_v18 }
  0xd3   : > { %v615_v21 = vmin.f32 %v583_v17, 6.0  ;;  %v503_v23 = vadd.f32 %v2351_v34, %v502_v19 }
  0xd4   : > { %696 = vst.msk [vmem:[#allocation2 + $0x121] sm:$0xff] %vm617_vm1, %v607_v20  ;;  %v560_v24 = vmax.f32 %v479_v22, 0.0 }
  0xd5   : > { %v568_v25 = vmax.f32 %v503_v23, 0.0  ;;  %704 = vst.msk [vmem:[#allocation2 + $0x181] sm:$0xff] %vm617_vm1, %v615_v21  ;;  %v526_v26 = vpop.f32.mrf.mxu2 }
  0xd6   : > { %v550_v27 = vpop.f32.mrf.mxu3  ;;  %v592_v28 = vmin.f32 %v560_v24, 6.0  ;;  %v527_v30 = vadd.f32 %v2351_v34, %v526_v26 }
  0xd7   : > { %v600_v29 = vmin.f32 %v568_v25, 6.0  ;;  %v551_v31 = vadd.f32 %v2351_v34, %v550_v27 }
  0xd8   : > { %681 = vst.msk [vmem:[#allocation2 + $0x69] sm:$0xff] %vm617_vm1, %v592_v28  ;;  %v576_v32 = vmax.f32 %v527_v30, 0.0 }
  0xd9   : > { %v584_v35 = vmax.f32 %v551_v31, 0.0  ;;  %689 = vst.msk [vmem:[#allocation2 + $0xc9] sm:$0xff] %vm617_vm1, %v600_v29 }
  0xda   : > { %v608_v33 = vmin.f32 %v576_v32, 6.0 }
  0xdb   : > { %v616_v36 = vmin.f32 %v584_v35, 6.0 }
  0xdc   : > { %697 = vst.msk [vmem:[#allocation2 + $0x129] sm:$0xff] %vm617_vm1, %v608_v33 }
  0xdd   : > { %705 = vst.msk [vmem:[#allocation2 + $0x189] sm:$0xff] %vm617_vm1, %v616_v36 }
  0xde PF: > { %v1657_v37 = vld [vmem:[%s3508_s5 + $0x28] sm:$0xff]  ;;  %v1656_v34 = vld [vmem:[%s3508_s5 + $0x20] sm:$0xff]  ;;  %s1967_s10 = smul.u32 192, %s2132_s24  ;;  %v1655_v38 = vld [vmem:[%s3508_s5 + $0x18] sm:$0xff]  ;;  %vm821_vm3 = vcmask 1046528   ;;  %vm943_vm4 = vcmask 1045504  }
  0xdf   : > { %2044 = vmatpush.msra.mxu2 %v1657_v37  ;;  %2045 = vmatpush.msra.mxu3 %v1657_v37  ;;  %v707_v39 = vld [vmem:[%s3506_s3] sm:$0xff]  ;;  %v1654_v45 = vld [vmem:[%s3508_s5 + $0x10] sm:$0xff]  ;;  %v1653_v56 = vld [vmem:[%s3508_s5 + $0x8] sm:$0xff]  ;;  %vm1662_vm5 = vcmask 392192   ;;  %s2036_s16 = sshll.u32 %s2132_s24, 7  ;;  %vm1810_vm6 = vcmask 64512  }
  0xe0   : > { %1721 = vmatpush.msra.mxu0 %v1657_v37  ;;  %2043 = vmatpush.msra.mxu1 %v1657_v37  ;;  %v2495_v40 = vld [vmem:[%s3507_s4] ss:$0 sm:$0xff]  ;;  %s2497_s19 = scalar_lea.vmem [#allocation2], %s1967_s10  ;;  %v2505_v43 = vperm.slane %v707_v39, 0  ;;  %v2507_v44 = vperm.slane %v707_v39, 1  ;;  %v2512_v46 = vperm.slane %v707_v39, 2  ;;  %s3414_s20 = scalar_lea.vmem %s2227_s13, %s2036_s16 }
  0xe1   : > { %2047 = vmatpush.msra.mxu2 %v1656_v34  ;;  %2048 = vmatpush.msra.mxu3 %v1656_v34  ;;  %v2517_v48 = vperm.slane %v707_v39, 3  ;;  %v2519_v49 = vperm.slane %v707_v39, 4  ;;  %v2521_v50 = vperm.slane %v707_v39, 5  ;;  %v2534_v55 = vperm.slane %v707_v39, 6  ;;  %v2556_v1 = vld [vmem:[%s3506_s3 + $0x8] ss:$0 sm:$0xff] }
  0xe2   : > { %1722 = vmatpush.msra.mxu0 %v1656_v34  ;;  %2046 = vmatpush.msra.mxu1 %v1656_v34  ;;  %v2547_v60 = vperm.slane %v707_v39, 7  ;;  %v1652_v2 = vld [vmem:[%s3508_s5] sm:$0xff] }
  0xe3   : > { %2050 = vmatpush.msra.mxu2 %v1655_v38  ;;  %2051 = vmatpush.msra.mxu3 %v1655_v38 }
  0xe4   : > { %v2500_v41 = vld [vmem:[%s2497_s19 + $0x60] sm:$0xff]  ;;  %v2503_v42 = vld [vmem:[%s2497_s19 + $0x68] sm:$0xff]  ;;  %v2515_v47 = vld [vmem:[%s2497_s19 + $0x78] sm:$0xff]  ;;  %1723 = vmatpush.msra.mxu0 %v1655_v38  ;;  %2049 = vmatpush.msra.mxu1 %v1655_v38 }
  0xe5   : > { %3581 = vst [vmem:[#allocation3_spill] sm:$0xff] %v2515_v47  ;;  %v748_v51 = vmul.f32 %v2505_v43, %v2500_v41  ;;  %v785_v52 = vmul.f32 %v2507_v44, %v2500_v41  ;;  %v2529_v53 = vmul.f32 %v2507_v44, %v2503_v42  ;;  %v2532_v54 = vld [vmem:[%s2497_s19 + $0x80] sm:$0xff]  ;;  %v907_v57 = vmul.f32 %v2512_v46, %v2500_v41  ;;  %v2569_v7 = vld [vmem:[%s2497_s19 + $0x90] sm:$0xff]  ;;  %v2585_v16 = vld [vmem:[%s2497_s19 + $0x98] sm:$0xff] }
  0xe6   : > { %3582 = vst [vmem:[#allocation4_spill] sm:$0xff] %v2532_v54  ;;  %v2543_v58 = vmul.f32 %v2512_v46, %v2503_v42  ;;  %v1052_v59 = vmul.f32 %v2515_v47, %v2517_v48  ;;  %2053 = vmatpush.msra.mxu2 %v1654_v45  ;;  %2054 = vmatpush.msra.mxu3 %v1654_v45  ;;  %v2610_v29 = vld [vmem:[%s2497_s19 + $0xa8] sm:$0xff]  ;;  %v2630_v38 = vld [vmem:[%s2497_s19 + $0xb0] sm:$0xff] }
  0xe7   : > { %v764_v61 = vadd.f32 %v2495_v40, %v748_v51  ;;  %v842_v62 = vrot.slane %v785_v52, 1  ;;  %v3526_v63 = vrot.slane %v2529_v53, 1  ;;  %v1089_v0 = vmul.f32 %v2515_v47, %v2519_v49  ;;  %3583 = vst [vmem:[#allocation5_spill] sm:$0xff] %v2569_v7  ;;  %1724 = vmatpush.msra.mxu0 %v1654_v45  ;;  %2052 = vmatpush.msra.mxu1 %v1654_v45 }
  0xe8   : > { %v964_v3 = vrot.slane %v907_v57, 2  ;;  %v3524_v4 = vrot.slane %v2543_v58, 2  ;;  %v2564_v5 = vmul.f32 %v2532_v54, %v2519_v49  ;;  %v1210_v6 = vmul.f32 %v2515_v47, %v2521_v50  ;;  %2056 = vmatpush.msra.mxu2 %v1653_v56  ;;  %2057 = vmatpush.msra.mxu3 %v1653_v56  ;;  %3584 = vst [vmem:[#allocation6_spill] sm:$0xff] %v2610_v29 }
  0xe9   : > { %v844_v8 = vsel %vm821_vm3, %v842_v62, %v3526_v63  ;;  %v1145_v9 = vrot.slane %v1089_v0, 1  ;;  %v2576_v10 = vmul.f32 %v2532_v54, %v2521_v50  ;;  %v1354_v11 = vmul.f32 %v2569_v7, %v2534_v55  ;;  %1725 = vmatpush.msra.mxu0 %v1653_v56  ;;  %2055 = vmatpush.msra.mxu1 %v1653_v56  ;;  %v2638_v56 = vld [vmem:[%s2497_s19 + $0xc0] sm:$0xff] }
  0xea   : > { %v886_v12 = vadd.f32 %v844_v8, %v764_v61  ;;  %v966_v13 = vsel %vm943_vm4, %v964_v3, %v3524_v4  ;;  %v3523_v14 = vrot.slane %v2564_v5, 1  ;;  %v1266_v15 = vrot.slane %v1210_v6, 2  ;;  %2059 = vmatpush.msra.mxu2 %v1652_v2  ;;  %2060 = vmatpush.msra.mxu3 %v1652_v2  ;;  %3585 = vst [vmem:[#allocation7_spill] sm:$0xff] %v2638_v56  ;;  %v2655_v8 = vld [vmem:[%s2497_s19 + $0xc8] sm:$0xff] }
  0xeb   : > { %v3522_v17 = vrot.slane %v2576_v10, 2  ;;  %v1391_v18 = vmul.f32 %v2569_v7, %v2547_v60  ;;  %v2592_v19 = vmul.f32 %v2585_v16, %v2547_v60  ;;  %v1512_v20 = vmul.f32 %v2556_v1, %v2569_v7  ;;  %1726 = vmatpush.msra.mxu0 %v1652_v2  ;;  %2058 = vmatpush.msra.mxu1 %v1652_v2 }
  0xec   : > { %v1008_v21 = vadd.f32 %v966_v13, %v886_v12  ;;  %v1147_v22 = vsel %vm821_vm3, %v1145_v9, %v3523_v14  ;;  %v2601_v23 = vmul.f32 %v2556_v1, %v2585_v16  ;;  %v752_v24 = vmul.f32 %v2569_v7, %v2505_v43 }
  0xed   : > { %v1268_v25 = vsel %vm943_vm4, %v1266_v15, %v3522_v17  ;;  %v1447_v26 = vrot.slane %v1391_v18, 1  ;;  %v3521_v27 = vrot.slane %v2592_v19, 1  ;;  %v1568_v28 = vrot.slane %v1512_v20, 2 }
  0xee   : > { %v1068_v30 = vadd.f32 %v1052_v59, %v1008_v21  ;;  %v3518_v31 = vrot.slane %v2601_v23, 2  ;;  %v768_v32 = vadd.f32 %v2495_v40, %v752_v24  ;;  %v791_v35 = vmul.f32 %v2569_v7, %v2507_v44 }
  0xef   : > { %v1449_v33 = vsel %vm821_vm3, %v1447_v26, %v3521_v27  ;;  %v2621_v36 = vmul.f32 %v2585_v16, %v2507_v44  ;;  %v913_v37 = vmul.f32 %v2569_v7, %v2512_v46  ;;  %v2627_v34 = vmul.f32 %v2585_v16, %v2512_v46  ;;  %v2010_v7 = vld [vmem:[%s2497_s19 + $0xa0] sm:$0x3] }
  0xf0   : > { %v1189_v39 = vadd.f32 %v1147_v22, %v1068_v30  ;;  %v1570_v45 = vsel %vm943_vm4, %v1568_v28, %v3518_v31  ;;  %v852_v51 = vrot.slane %v791_v35, 1  ;;  %v1056_v52 = vmul.f32 %v2610_v29, %v2517_v48  ;;  %v715_v30 = vld [vmem:[%s2497_s19] sm:$0xff] }
  0xf1   : > { %v3517_v57 = vrot.slane %v2621_v36, 1  ;;  %v974_v59 = vrot.slane %v913_v37, 2  ;;  %v3516_v61 = vrot.slane %v2627_v34, 2  ;;  %v1095_v62 = vmul.f32 %v2610_v29, %v2519_v49 }
  0xf2   : > { %v1310_v0 = vadd.f32 %v1268_v25, %v1189_v39  ;;  %v2646_v2 = vmul.f32 %v2630_v38, %v2519_v49  ;;  %v1216_v3 = vmul.f32 %v2610_v29, %v2521_v50  ;;  %v2652_v6 = vmul.f32 %v2630_v38, %v2521_v50  ;;  %v2684_v39 = vld [vmem:[%s2497_s19 + $0x8] sm:$0xff] }
  0xf3   : > { %v854_v9 = vsel %vm821_vm3, %v852_v51, %v3517_v57  ;;  %v976_v12 = vsel %vm943_vm4, %v974_v59, %v3516_v61  ;;  %v1155_v13 = vrot.slane %v1095_v62, 1  ;;  %v1358_v15 = vmul.f32 %v2638_v56, %v2534_v55 }
  0xf4   : > { %v1370_v18 = vadd.f32 %v1354_v11, %v1310_v0  ;;  %v890_v20 = vadd.f32 %v854_v9, %v768_v32  ;;  %v3513_v21 = vrot.slane %v2646_v2, 1  ;;  %v1276_v22 = vrot.slane %v1216_v3, 2 }
  0xf5   : > { %v3512_v24 = vrot.slane %v2652_v6, 2  ;;  %v1397_v25 = vmul.f32 %v2638_v56, %v2547_v60  ;;  %v2671_v26 = vmul.f32 %v2655_v8, %v2547_v60  ;;  %v1518_v28 = vmul.f32 %v2556_v1, %v2638_v56 }
  0xf6   : > { %v1491_v35 = vadd.f32 %v1449_v33, %v1370_v18  ;;  %v1012_v37 = vadd.f32 %v976_v12, %v890_v20  ;;  %v1157_v11 = vsel %vm821_vm3, %v1155_v13, %v3513_v21  ;;  %v2681_v32 = vmul.f32 %v2556_v1, %v2655_v8 }
  0xf7   : > { %v1278_v51 = vsel %vm943_vm4, %v1276_v22, %v3512_v24  ;;  %v1457_v59 = vrot.slane %v1397_v25, 1  ;;  %v3511_v33 = vrot.slane %v2671_v26, 1  ;;  %v1578_v62 = vrot.slane %v1518_v28, 2  ;;  %v2702_v25 = vld [vmem:[%s2497_s19 + $0x18] sm:$0xff] }
  0xf8   : > { %v1612_v0 = vadd.f32 %v1570_v45, %v1491_v35  ;;  %v1072_v3 = vadd.f32 %v1056_v52, %v1012_v37  ;;  %v3514_v9 = vrot.slane %v2681_v32, 2  ;;  %v740_v12 = vmul.f32 %v2505_v43, %v715_v30  ;;  %3586 = vst [vmem:[#allocation8_spill] sm:$0xff] %v2702_v25  ;;  %v2709_v37 = vld [vmem:[%s2497_s19 + $0x20] sm:$0xff] }
  0xf9   : > { %v1459_v13 = vsel %vm821_vm3, %v1457_v59, %v3511_v33  ;;  %v773_v18 = vmul.f32 %v2507_v44, %v715_v30  ;;  %v2698_v20 = vmul.f32 %v2507_v44, %v2684_v39  ;;  %v895_v22 = vmul.f32 %v2512_v46, %v715_v30 }
  0xfa   : > { %v1628_v45 = vmax.f32 %v1612_v0, 0.0  ;;  %v1193_v52 = vadd.f32 %v1157_v11, %v1072_v3  ;;  %v1580_v28 = vsel %vm943_vm4, %v1578_v62, %v3514_v9  ;;  %v756_v35 = vadd.f32 %v2495_v40, %v740_v12 }
  0xfb   : > { %v822_v59 = vrot.slane %v773_v18, 1  ;;  %v3515_v33 = vrot.slane %v2698_v20, 1  ;;  %v2714_v24 = vmul.f32 %v2512_v46, %v2684_v39  ;;  %v944_v30 = vrot.slane %v895_v22, 2 }
  0xfc   : > { %v1644_v21 = vmin.f32 %v1628_v45, 6.0  ;;  %v1314_v0 = vadd.f32 %v1278_v51, %v1193_v52  ;;  %v1044_v11 = vmul.f32 %v2702_v25, %v2517_v48  ;;  %v1077_v62 = vmul.f32 %v2702_v25, %v2519_v49 }
  0xfd   : > { %v824_v3 = vsel %vm821_vm3, %v822_v59, %v3515_v33  ;;  %v3520_v12 = vrot.slane %v2714_v24, 2  ;;  %v2726_v18 = vmul.f32 %v2709_v37, %v2519_v49  ;;  %v1198_v51 = vmul.f32 %v2702_v25, %v2521_v50  ;;  %v2736_v59 = vld [vmem:[%s2497_s19 + $0x30] sm:$0xff] }
  0xfe   : > { %2028 = vmatmul.msk.f32.vlgmr.msra.gmra.mxu2 %vm1662_vm5, %v1644_v21  ;;  %v1374_v22 = vadd.f32 %v1358_v15, %v1314_v0  ;;  %v878_v45 = vadd.f32 %v824_v3, %v756_v35  ;;  %v1125_v52 = vrot.slane %v1077_v62, 1  ;;  %v2733_v9 = vmul.f32 %v2709_v37, %v2521_v50  ;;  %3587 = vst [vmem:[#allocation9_spill] sm:$0xff] %v2736_v59  ;;  %v2746_v0 = vld [vmem:[%s2497_s19 + $0x38] sm:$0xff] }
  0xff   : > { %v946_v33 = vsel %vm943_vm4, %v944_v30, %v3520_v12  ;;  %v3519_v61 = vrot.slane %v2726_v18, 1  ;;  %v1246_v57 = vrot.slane %v1198_v51, 2  ;;  %v1346_v31 = vmul.f32 %v2736_v59, %v2534_v55 }
 0x100   : > { %v1495_v21 = vadd.f32 %v1459_v13, %v1374_v22  ;;  %v1000_v15 = vadd.f32 %v946_v33, %v878_v45  ;;  %v3525_v35 = vrot.slane %v2733_v9, 2  ;;  %v1379_v62 = vmul.f32 %v2736_v59, %v2547_v60 }
 0x101   : > { %v1127_v3 = vsel %vm821_vm3, %v1125_v52, %v3519_v61  ;;  %v2755_v30 = vmul.f32 %v2746_v0, %v2547_v60  ;;  %v1500_v13 = vmul.f32 %v2556_v1, %v2736_v59  ;;  %v2761_v33 = vmul.f32 %v2556_v1, %v2746_v0 }
 0x102   : > { %v1616_v51 = vadd.f32 %v1580_v28, %v1495_v21  ;;  %v1060_v22 = vadd.f32 %v1044_v11, %v1000_v15  ;;  %v1248_v45 = vsel %vm943_vm4, %v1246_v57, %v3525_v35  ;;  %v1427_v52 = vrot.slane %v1379_v62, 1  ;;  %v2777_v21 = vld [vmem:[%s2497_s19 + $0x48] sm:$0xff] }
 0x103   : > { %v3530_v61 = vrot.slane %v2755_v30, 1  ;;  %v1548_v12 = vrot.slane %v1500_v13, 2  ;;  %v3529_v27 = vrot.slane %v2761_v33, 2  ;;  %v744_v17 = vmul.f32 %v2736_v59, %v2505_v43  ;;  %3588 = vst [vmem:[#allocation10_spill] sm:$0xff] %v2777_v21  ;;  %v2789_v13 = vld [vmem:[%s2497_s19 + $0x50] sm:$0xff] }
 0x104   : > { %v1632_v14 = vmax.f32 %v1616_v51, 0.0  ;;  %v1181_v4 = vadd.f32 %v1127_v3, %v1060_v22  ;;  %v779_v28 = vmul.f32 %v2736_v59, %v2507_v44  ;;  %v2774_v11 = vmul.f32 %v2746_v0, %v2507_v44 }
 0x105   : > { %v1429_v57 = vsel %vm821_vm3, %v1427_v52, %v3530_v61  ;;  %v1550_v15 = vsel %vm943_vm4, %v1548_v12, %v3529_v27  ;;  %v760_v62 = vadd.f32 %v2495_v40, %v744_v17  ;;  %v901_v3 = vmul.f32 %v2736_v59, %v2512_v46 }
 0x106   : > { %v1648_v51 = vmin.f32 %v1632_v14, 6.0  ;;  %v1302_v22 = vadd.f32 %v1248_v45, %v1181_v4  ;;  %v832_v35 = vrot.slane %v779_v28, 1  ;;  %v3531_v63 = vrot.slane %v2774_v11, 1 }
 0x107   : > { %v2794_v25 = vmul.f32 %v2746_v0, %v2512_v46  ;;  %v954_v52 = vrot.slane %v901_v3, 2  ;;  %v1048_v12 = vmul.f32 %v2777_v21, %v2517_v48  ;;  %v1083_v17 = vmul.f32 %v2777_v21, %v2519_v49 }
 0x108   : > { %2032 = vmatmul.msk.f32.vlgmr.msra.gmra.mxu3 %vm1662_vm5, %v1648_v51  ;;  %v1362_v27 = vadd.f32 %v1346_v31, %v1302_v22  ;;  %v834_v4 = vsel %vm821_vm3, %v832_v35, %v3531_v63  ;;  %v2806_v14 = vmul.f32 %v2789_v13, %v2519_v49  ;;  %v1204_v45 = vmul.f32 %v2777_v21, %v2521_v50 }
 0x109   : > { %3589 = vst [vmem:[#allocation11_spill] sm:$0xff] %v2794_v25  ;;  %v882_v28 = vadd.f32 %v834_v4, %v760_v62  ;;  %v3534_v3 = vrot.slane %v2794_v25, 2  ;;  %v1135_v61 = vrot.slane %v1083_v17, 1  ;;  %v2813_v51 = vmul.f32 %v2789_v13, %v2521_v50 }
 0x10a   : > { %3590 = vst [vmem:[#allocation12_spill] sm:$0xff] %v2806_v14  ;;  %v1483_v31 = vadd.f32 %v1429_v57, %v1362_v27  ;;  %v3541_v22 = vrot.slane %v2806_v14, 1  ;;  %v1256_v35 = vrot.slane %v1204_v45, 2  ;;  %v1350_v63 = vmul.f32 %v2534_v55, %v2500_v41 }
 0x10b   : > { %3591 = vst [vmem:[#allocation13_spill] sm:$0xff] %v2813_v51  ;;  %v956_v21 = vsel %vm943_vm4, %v954_v52, %v3534_v3  ;;  %v3542_v62 = vrot.slane %v2813_v51, 2  ;;  %v1385_v17 = vmul.f32 %v2547_v60, %v2500_v41  ;;  %v2826_v4 = vmul.f32 %v2547_v60, %v2503_v42  ;;  %v729_v3 = vld [vmem:[%s2497_s19 + $0x70] sm:$0x3] }
 0x10c   : > { %v1604_v27 = vadd.f32 %v1550_v15, %v1483_v31  ;;  %v1004_v57 = vadd.f32 %v956_v21, %v882_v28  ;;  %v1137_v45 = vsel %vm821_vm3, %v1135_v61, %v3541_v22  ;;  %v1506_v52 = vmul.f32 %v2556_v1, %v2500_v41  ;;  %v1984_v22 = vld [vmem:[%s2497_s19 + $0x88] sm:$0x3] }
 0x10d   : > { %3592 = vst [vmem:[#allocation14_spill] sm:$0xff] %v2826_v4  ;;  %v1258_v59 = vsel %vm943_vm4, %v1256_v35, %v3542_v62  ;;  %v1437_v56 = vrot.slane %v1385_v17, 1  ;;  %v3547_v29 = vrot.slane %v2826_v4, 1  ;;  %v2840_v15 = vmul.f32 %v2556_v1, %v2503_v42 }
 0x10e   : > { %v1620_v21 = vmax.f32 %v1604_v27, 0.0  ;;  %v1064_v28 = vadd.f32 %v1048_v12, %v1004_v57  ;;  %v1558_v31 = vrot.slane %v1506_v52, 2  ;;  %v749_v61 = vmul.f32 %v2505_v43, %v2503_v42 }
 0x10f   : > { %3593 = vst [vmem:[#allocation15_spill] sm:$0xff] %v2840_v15  ;;  %v1439_v41 = vsel %vm821_vm3, %v1437_v56, %v3547_v29  ;;  %v3550_v35 = vrot.slane %v2840_v15, 2  ;;  %v787_v17 = vmul.f32 %v2507_v44, %v729_v3  ;;  %v909_v62 = vmul.f32 %v2512_v46, %v729_v3 }
 0x110   : > { %v1636_v47 = vmin.f32 %v1620_v21, 6.0  ;;  %v1185_v27 = vadd.f32 %v1137_v45, %v1064_v28  ;;  %v765_v12 = vadd.f32 %v2495_v40, %v749_v61  ;;  %v1053_v57 = vmul.f32 %v2532_v54, %v2517_v48  ;;  %v735_v28 = vld [vmem:[%s2497_s19 + $0xa0] sm:$0x3] }
 0x111   : > { %v1560_v52 = vsel %vm943_vm4, %v1558_v31, %v3550_v35  ;;  %v845_v56 = vrot.slane %v787_v17, 1  ;;  %v967_v29 = vrot.slane %v909_v62, 2  ;;  %v1091_v4 = vmul.f32 %v1984_v22, %v2519_v49 }
 0x112   : > { %2020 = vmatmul.msk.f32.vlgmr.msra.gmra.mxu0 %vm1662_vm5, %v1636_v47  ;;  %v1306_v51 = vadd.f32 %v1258_v59, %v1185_v27  ;;  %v1212_v3 = vmul.f32 %v1984_v22, %v2521_v50  ;;  %v1355_v45 = vmul.f32 %v2585_v16, %v2534_v55  ;;  %v1393_v21 = vmul.f32 %v2010_v7, %v2547_v60 }
 0x113   : > { %v3594_v61 = vrot.slane %v2529_v53, 1  ;;  %v3595_v62 = vrot.slane %v2543_v58, 2  ;;  %v1148_v35 = vrot.slane %v1091_v4, 1  ;;  %v1514_v47 = vmul.f32 %v2556_v1, %v2010_v7 }
 0x114   : > { %v1366_v59 = vadd.f32 %v1350_v63, %v1306_v51  ;;  %v1269_v27 = vrot.slane %v1212_v3, 2  ;;  %v1450_v15 = vrot.slane %v1393_v21, 1  ;;  %v3596_v54 = vrot.slane %v2564_v5, 1 }
 0x115   : > { %v846_v31 = vsel %vm821_vm3, %v3594_v61, %v845_v56  ;;  %v968_v17 = vsel %vm943_vm4, %v3595_v62, %v967_v29  ;;  %v1571_v25 = vrot.slane %v1514_v47, 2  ;;  %v753_v53 = vmul.f32 %v2585_v16, %v2505_v43  ;;  %v1990_v56 = vld [vmem:[%s2497_s19 + $0xb8] sm:$0x3] }
 0x116   : > { %v887_v22 = vadd.f32 %v846_v31, %v765_v12  ;;  %v1149_v14 = vsel %vm821_vm3, %v3596_v54, %v1148_v35  ;;  %v793_v58 = vmul.f32 %v2507_v44, %v735_v28  ;;  %v1487_v29 = vadd.f32 %v1439_v41, %v1366_v59 }
 0x117   : > { %v3597_v7 = vrot.slane %v2576_v10, 2  ;;  %v3598_v51 = vrot.slane %v2592_v19, 1  ;;  %v3599_v54 = vrot.slane %v2601_v23, 2  ;;  %v769_v12 = vadd.f32 %v2495_v40, %v753_v53  ;;  %v2016_v19 = vld [vmem:[%s2497_s19 + $0xd0] sm:$0x3] }
 0x118   : > { %v1009_v4 = vadd.f32 %v968_v17, %v887_v22  ;;  %v855_v3 = vrot.slane %v793_v58, 1  ;;  %v915_v21 = vmul.f32 %v2512_v46, %v735_v28  ;;  %v1608_v61 = vadd.f32 %v1560_v52, %v1487_v29  ;;  %v717_v58 = vld [vmem:[%s2497_s19 + $0x10] sm:$0x3] }
 0x119   : > { %v1270_v63 = vsel %vm943_vm4, %v3597_v7, %v1269_v27  ;;  %v1451_v5 = vsel %vm821_vm3, %v3598_v51, %v1450_v15  ;;  %v1572_v35 = vsel %vm943_vm4, %v3599_v54, %v1571_v25  ;;  %v1057_v10 = vmul.f32 %v2630_v38, %v2517_v48 }
 0x11a   : > { %v1069_v41 = vadd.f32 %v1053_v57, %v1009_v4  ;;  %v1097_v31 = vmul.f32 %v1990_v56, %v2519_v49  ;;  %v3600_v15 = vrot.slane %v2621_v36, 1  ;;  %v977_v62 = vrot.slane %v915_v21, 2 }
 0x11b   : > { %v1218_v25 = vmul.f32 %v1990_v56, %v2521_v50  ;;  %v1359_v17 = vmul.f32 %v2655_v8, %v2534_v55  ;;  %v1624_v28 = vmax.f32 %v1608_v61, 0.0  ;;  %v3601_v59 = vrot.slane %v2627_v34, 2 }
 0x11c   : > { %v856_v23 = vsel %vm821_vm3, %v3600_v15, %v855_v3  ;;  %v1190_v52 = vadd.f32 %v1149_v14, %v1069_v41  ;;  %v1158_v47 = vrot.slane %v1097_v31, 1  ;;  %v1399_v53 = vmul.f32 %v2016_v19, %v2547_v60  ;;  %v1998_v31 = vld [vmem:[%s2497_s19 + $0x40] sm:$0x3] }
 0x11d   : > { %v891_v57 = vadd.f32 %v856_v23, %v769_v12  ;;  %v978_v22 = vsel %vm943_vm4, %v3601_v59, %v977_v62  ;;  %v1279_v27 = vrot.slane %v1218_v25, 2  ;;  %v1520_v36 = vmul.f32 %v2556_v1, %v2016_v19 }
 0x11e   : > { %v1640_v56 = vmin.f32 %v1624_v28, 6.0  ;;  %v1311_v29 = vadd.f32 %v1270_v63, %v1190_v52  ;;  %v3602_v7 = vrot.slane %v2646_v2, 1  ;;  %v3603_v51 = vrot.slane %v2652_v6, 2  ;;  %v1972_v2 = vld [vmem:[%s2497_s19 + $0x28] sm:$0x3] }
 0x11f   : > { %v1013_v4 = vadd.f32 %v978_v22, %v891_v57  ;;  %v1460_v54 = vrot.slane %v1399_v53, 1  ;;  %v1581_v12 = vrot.slane %v1520_v36, 2  ;;  %v741_v3 = vmul.f32 %v2505_v43, %v2684_v39 }
 0x120   : > { %v1159_v14 = vsel %vm821_vm3, %v3602_v7, %v1158_v47  ;;  %v1280_v34 = vsel %vm943_vm4, %v3603_v51, %v1279_v27  ;;  %2024 = vmatmul.msk.f32.vlgmr.msra.gmra.mxu1 %vm1662_vm5, %v1640_v56  ;;  %v1371_v21 = vadd.f32 %v1355_v45, %v1311_v29  ;;  %v775_v63 = vmul.f32 %v2507_v44, %v717_v58 }
 0x121   : > { %v1073_v61 = vadd.f32 %v1057_v10, %v1013_v4  ;;  %v897_v41 = vmul.f32 %v2512_v46, %v717_v58  ;;  %v3604_v19 = vrot.slane %v2671_v26, 1  ;;  %v3605_v15 = vrot.slane %v2681_v32, 2 }
 0x122   : > { %v757_v39 = vadd.f32 %v2495_v40, %v741_v3  ;;  %v1045_v45 = vmul.f32 %v2709_v37, %v2517_v48  ;;  %v1492_v10 = vadd.f32 %v1451_v5, %v1371_v21  ;;  %v825_v25 = vrot.slane %v775_v63, 1  ;;  %v1978_v21 = vld [vmem:[%s2497_s19 + $0x58] sm:$0x3] }
 0x123   : > { %v1461_v6 = vsel %vm821_vm3, %v3604_v19, %v1460_v54  ;;  %v1582_v23 = vsel %vm943_vm4, %v3605_v15, %v1581_v12  ;;  %v1194_v62 = vadd.f32 %v1159_v14, %v1073_v61  ;;  %v947_v28 = vrot.slane %v897_v41, 2  ;;  %v2004_v15 = vld [vmem:[%s2497_s19 + $0x70] sm:$0x3] }
 0x124   : > { %v1079_v52 = vmul.f32 %v1972_v2, %v2519_v49  ;;  %v1200_v26 = vmul.f32 %v1972_v2, %v2521_v50  ;;  %v1347_v57 = vmul.f32 %v2746_v0, %v2534_v55  ;;  %v1381_v32 = vmul.f32 %v1998_v31, %v2547_v60 }
 0x125   : > { %v1613_v47 = vadd.f32 %v1572_v35, %v1492_v10  ;;  %v1315_v59 = vadd.f32 %v1280_v34, %v1194_v62  ;;  %v3606_v22 = vrot.slane %v2698_v20, 1  ;;  %v3607_v27 = vrot.slane %v2714_v24, 2  ;;  %v723_v35 = vld [vmem:[%s2497_s19 + $0x40] sm:$0x3] }
 0x126   : > { %v1128_v58 = vrot.slane %v1079_v52, 1  ;;  %v1249_v56 = vrot.slane %v1200_v26, 2  ;;  %v1430_v29 = vrot.slane %v1381_v32, 1  ;;  %v1502_v14 = vmul.f32 %v2556_v1, %v1998_v31 }
 0x127   : > { %v826_v5 = vsel %vm821_vm3, %v3606_v22, %v825_v25  ;;  %v948_v53 = vsel %vm943_vm4, %v3607_v27, %v947_v28  ;;  %v1629_v4 = vmax.f32 %v1613_v47, 0.0  ;;  %v1375_v7 = vadd.f32 %v1359_v17, %v1315_v59 }
 0x128   : > { %v879_v36 = vadd.f32 %v826_v5, %v757_v39  ;;  %v745_v20 = vmul.f32 %v2746_v0, %v2505_v43  ;;  %v3608_v34 = vrot.slane %v2726_v18, 1  ;;  %v3609_v54 = vrot.slane %v2733_v9, 2  ;;  %v3613_v5 = vld [vmem:[#allocation11_spill] sm:$0xff] }
 0x129   : > { %v3610_v3 = vrot.slane %v2755_v30, 1  ;;  %v1645_v61 = vmin.f32 %v1629_v4, 6.0  ;;  %v1496_v63 = vadd.f32 %v1461_v6, %v1375_v7  ;;  %v1551_v41 = vrot.slane %v1502_v14, 2  ;;  %v3617_v7 = vld [vmem:[#allocation13_spill] sm:$0xff] }
 0x12a   : > { %v1001_v51 = vadd.f32 %v948_v53, %v879_v36  ;;  %v1129_v24 = vsel %vm821_vm3, %v3608_v34, %v1128_v58  ;;  %v1250_v12 = vsel %vm943_vm4, %v3609_v54, %v1249_v56  ;;  %v761_v2 = vadd.f32 %v2495_v40, %v745_v20  ;;  %v3619_v34 = vld [vmem:[#allocation3_spill] sm:$0xff] }
 0x12b   : > { %v1431_v17 = vsel %vm821_vm3, %v3610_v3, %v1430_v29  ;;  %v781_v19 = vmul.f32 %v2507_v44, %v723_v35  ;;  %v903_v18 = vmul.f32 %v2512_v46, %v723_v35  ;;  %v1049_v9 = vmul.f32 %v2789_v13, %v2517_v48  ;;  %2029 = vmatmul.msk.f32.gmra.mxu2 %vm1662_vm5, %v1645_v61  ;;  %v3615_v29 = vld [vmem:[#allocation12_spill] sm:$0xff] }
 0x12c   : > { %v1061_v31 = vadd.f32 %v1045_v45, %v1001_v51  ;;  %v1617_v30 = vadd.f32 %v1582_v23, %v1496_v63  ;;  %v3611_v39 = vrot.slane %v2761_v33, 2  ;;  %v1085_v6 = vmul.f32 %v1978_v21, %v2519_v49  ;;  %v3620_v3 = vld [vmem:[#allocation4_spill] sm:$0xff] }
 0x12d   : > { %v1206_v62 = vmul.f32 %v1978_v21, %v2521_v50  ;;  %v835_v25 = vrot.slane %v781_v19, 1  ;;  %v957_v28 = vrot.slane %v903_v18, 2  ;;  %v1351_v52 = vmul.f32 %v2534_v55, %v2503_v42 }
 0x12e   : > { %v1552_v10 = vsel %vm943_vm4, %v3611_v39, %v1551_v41  ;;  %v1182_v45 = vadd.f32 %v1129_v24, %v1061_v31  ;;  %v1633_v26 = vmax.f32 %v1617_v30, 0.0  ;;  %v1138_v32 = vrot.slane %v1085_v6, 1  ;;  %v3623_v31 = vld [vmem:[#allocation15_spill] sm:$0xff] }
 0x12f   : > { %v1259_v47 = vrot.slane %v1206_v62, 2  ;;  %v1387_v59 = vmul.f32 %v2004_v15, %v2547_v60  ;;  %v3612_v33 = vrot.slane %v2774_v11, 1  ;;  %v3614_v27 = vrot.slane %v3613_v5, 2 }
 0x130   : > { %v1303_v23 = vadd.f32 %v1250_v12, %v1182_v45  ;;  %v1508_v36 = vmul.f32 %v2556_v1, %v2004_v15  ;;  %v1649_v58 = vmin.f32 %v1633_v26, 6.0  ;;  %v3616_v42 = vrot.slane %v3615_v29, 1 }
 0x131   : > { %v836_v22 = vsel %vm821_vm3, %v3612_v33, %v835_v25  ;;  %v958_v53 = vsel %vm943_vm4, %v3614_v27, %v957_v28  ;;  %v3618_v14 = vrot.slane %v3617_v7, 2  ;;  %v1440_v11 = vrot.slane %v1387_v59, 1  ;;  %v3625_v25 = vld [vmem:[#allocation5_spill] sm:$0xff] }
 0x132   : > { %v883_v56 = vadd.f32 %v836_v22, %v761_v2  ;;  %v1139_v4 = vsel %vm821_vm3, %v3616_v42, %v1138_v32  ;;  %v1363_v20 = vadd.f32 %v1347_v57, %v1303_v23  ;;  %v1561_v51 = vrot.slane %v1508_v36, 2  ;;  %2033 = vmatmul.msk.f32.gmra.mxu3 %vm1662_vm5, %v1649_v58  ;;  %v3621_v57 = vld [vmem:[#allocation14_spill] sm:$0xff] }
 0x133   : > { %v1260_v35 = vsel %vm943_vm4, %v3618_v14, %v1259_v47  ;;  %v750_v24 = vmul.f32 %v3619_v34, %v2505_v43  ;;  %v788_v12 = vmul.f32 %v3619_v34, %v2507_v44  ;;  %v2988_v21 = vmul.f32 %v3620_v3, %v2507_v44  ;;  %v3626_v42 = vld [vmem:[#allocation6_spill] sm:$0xff] }
 0x134   : > { %v1005_v54 = vadd.f32 %v958_v53, %v883_v56  ;;  %v910_v61 = vmul.f32 %v3619_v34, %v2512_v46  ;;  %v1484_v63 = vadd.f32 %v1431_v17, %v1363_v20  ;;  %v3622_v41 = vrot.slane %v3621_v57, 1 }
 0x135   : > { %v3624_v19 = vrot.slane %v3623_v31, 2  ;;  %v766_v15 = vadd.f32 %v2495_v40, %v750_v24  ;;  %v847_v39 = vrot.slane %v788_v12, 1  ;;  %v3577_v6 = vrot.slane %v2988_v21, 1 }
 0x136   : > { %v1441_v2 = vsel %vm821_vm3, %v3622_v41, %v1440_v11  ;;  %v1065_v30 = vadd.f32 %v1049_v9, %v1005_v54  ;;  %v3002_v62 = vmul.f32 %v3620_v3, %v2512_v46  ;;  %v1605_v45 = vadd.f32 %v1552_v10, %v1484_v63 }
 0x137   : > { %v1562_v18 = vsel %vm943_vm4, %v3624_v19, %v1561_v51  ;;  %v969_v17 = vrot.slane %v910_v61, 2  ;;  %v1054_v28 = vmul.f32 %v3625_v25, %v2517_v48  ;;  %v1092_v26 = vmul.f32 %v3625_v25, %v2519_v49 }
 0x138   : > { %v1186_v32 = vadd.f32 %v1139_v4, %v1065_v30  ;;  %v849_v9 = vsel %vm821_vm3, %v847_v39, %v3577_v6  ;;  %v3575_v47 = vrot.slane %v3002_v62, 2  ;;  %v3014_v59 = vmul.f32 %v2585_v16, %v2519_v49  ;;  %v738_v6 = vld [vmem:[%s2497_s19 + $0xb8] sm:$0x3] }
 0x139   : > { %v1621_v23 = vmax.f32 %v1605_v45, 0.0  ;;  %v888_v10 = vadd.f32 %v849_v9, %v766_v15  ;;  %v1150_v33 = vrot.slane %v1092_v26, 1  ;;  %v1213_v22 = vmul.f32 %v3625_v25, %v2521_v50  ;;  %v3627_v9 = vld [vmem:[#allocation7_spill] sm:$0xff] }
 0x13a   : > { %v1307_v5 = vadd.f32 %v1260_v35, %v1186_v32  ;;  %v971_v27 = vsel %vm943_vm4, %v969_v17, %v3575_v47  ;;  %v3574_v53 = vrot.slane %v3014_v59, 1  ;;  %v3024_v36 = vmul.f32 %v2585_v16, %v2521_v50 }
 0x13b   : > { %v1637_v58 = vmin.f32 %v1621_v23, 6.0  ;;  %v1010_v56 = vadd.f32 %v971_v27, %v888_v10  ;;  %v1271_v29 = vrot.slane %v1213_v22, 2  ;;  %v1356_v4 = vmul.f32 %v3626_v42, %v2534_v55 }
 0x13c   : > { %v1367_v7 = vadd.f32 %v1351_v52, %v1307_v5  ;;  %v1152_v14 = vsel %vm821_vm3, %v1150_v33, %v3574_v53  ;;  %v3573_v35 = vrot.slane %v3024_v36, 2  ;;  %v1394_v20 = vmul.f32 %v3626_v42, %v2547_v60  ;;  %v2017_v33 = vld [vmem:[%s2497_s19 + $0xd8] sm:$0xff] }
 0x13d   : > { %2021 = vmatmul.msk.f32.gmra.mxu0 %vm1662_vm5, %v1637_v58  ;;  %v1070_v16 = vadd.f32 %v1054_v28, %v1010_v56  ;;  %v3037_v11 = vmul.f32 %v2630_v38, %v2547_v60  ;;  %v1515_v51 = vmul.f32 %v2556_v1, %v3626_v42  ;;  %v3043_v52 = vmul.f32 %v2556_v1, %v2630_v38 }
 0x13e   : > { %v1488_v34 = vadd.f32 %v1441_v2, %v1367_v7  ;;  %v1273_v24 = vsel %vm943_vm4, %v1271_v29, %v3573_v35  ;;  %v1452_v54 = vrot.slane %v1394_v20, 1  ;;  %v754_v12 = vmul.f32 %v3626_v42, %v2505_v43  ;;  %v3088_v7 = vld [vmem:[%s2497_s19 + $0xe0] sm:$0xff] }
 0x13f   : > { %v1191_v3 = vadd.f32 %v1152_v14, %v1070_v16  ;;  %v3569_v61 = vrot.slane %v3037_v11, 1  ;;  %v1573_v63 = vrot.slane %v1515_v51, 2  ;;  %v3566_v57 = vrot.slane %v3043_v52, 2 }
 0x140   : > { %v1609_v41 = vadd.f32 %v1562_v18, %v1488_v34  ;;  %v770_v31 = vadd.f32 %v2495_v40, %v754_v12  ;;  %v794_v2 = vmul.f32 %v3626_v42, %v2507_v44  ;;  %v3057_v19 = vmul.f32 %v2630_v38, %v2507_v44 }
 0x141   : > { %v1312_v15 = vadd.f32 %v1273_v24, %v1191_v3  ;;  %v1454_v30 = vsel %vm821_vm3, %v1452_v54, %v3569_v61  ;;  %v1575_v39 = vsel %vm943_vm4, %v1573_v63, %v3566_v57  ;;  %v916_v18 = vmul.f32 %v3626_v42, %v2512_v46  ;;  %v3231_v57 = vld [vmem:[%s2497_s19 + $0x80] sm:$0xff] }
 0x142   : > { %v1625_v45 = vmax.f32 %v1609_v41, 0.0  ;;  %v857_v17 = vrot.slane %v794_v2, 1  ;;  %v3572_v25 = vrot.slane %v3057_v19, 1  ;;  %v3070_v28 = vmul.f32 %v2630_v38, %v2512_v46 }
 0x143   : > { %v1372_v26 = vadd.f32 %v1356_v4, %v1312_v15  ;;  %v979_v32 = vrot.slane %v916_v18, 2  ;;  %v1058_v23 = vmul.f32 %v3627_v9, %v2517_v48  ;;  %v1098_v10 = vmul.f32 %v3627_v9, %v2519_v49 }
 0x144   : > { %v1641_v22 = vmin.f32 %v1625_v45, 6.0  ;;  %v859_v5 = vsel %vm821_vm3, %v857_v17, %v3572_v25  ;;  %v3568_v27 = vrot.slane %v3070_v28, 2  ;;  %v3083_v58 = vmul.f32 %v2655_v8, %v2519_v49 }
 0x145   : > { %v1493_v56 = vadd.f32 %v1454_v30, %v1372_v26  ;;  %v892_v29 = vadd.f32 %v859_v5, %v770_v31  ;;  %v1160_v42 = vrot.slane %v1098_v10, 1  ;;  %v1219_v4 = vmul.f32 %v3627_v9, %v2521_v50  ;;  %v3628_v26 = vld [vmem:[#allocation8_spill] sm:$0xff] }
 0x146   : > { %2025 = vmatmul.msk.f32.gmra.mxu1 %vm1662_vm5, %v1641_v22  ;;  %v981_v14 = vsel %vm943_vm4, %v979_v32, %v3568_v27  ;;  %v3564_v20 = vrot.slane %v3083_v58, 1  ;;  %v3097_v16 = vmul.f32 %v2655_v8, %v2521_v50  ;;  %v1360_v51 = vmul.f32 %v2017_v33, %v2534_v55 }
 0x147   : > { %v1614_v34 = vadd.f32 %v1575_v39, %v1493_v56  ;;  %v1014_v24 = vadd.f32 %v981_v14, %v892_v29  ;;  %v1281_v54 = vrot.slane %v1219_v4, 2  ;;  %v1400_v12 = vmul.f32 %v2017_v33, %v2547_v60 }
 0x148   : > { %v1162_v3 = vsel %vm821_vm3, %v1160_v42, %v3564_v20  ;;  %v3563_v63 = vrot.slane %v3097_v16, 2  ;;  %v3107_v41 = vmul.f32 %v3088_v7, %v2547_v60  ;;  %v1521_v31 = vmul.f32 %v2556_v1, %v2017_v33 }
 0x149   : > { %v1630_v2 = vmax.f32 %v1614_v34, 0.0  ;;  %v1074_v15 = vadd.f32 %v1058_v23, %v1014_v24  ;;  %v1462_v30 = vrot.slane %v1400_v12, 1  ;;  %v3112_v39 = vmul.f32 %v2556_v1, %v3088_v7  ;;  %v3629_v12 = vld [vmem:[#allocation9_spill] sm:$0xff] }
 0x14a   : > { %v1283_v18 = vsel %vm943_vm4, %v1281_v54, %v3563_v63  ;;  %v3557_v45 = vrot.slane %v3107_v41, 1  ;;  %v1583_v17 = vrot.slane %v1521_v31, 2  ;;  %v742_v32 = vmul.f32 %v3628_v26, %v2505_v43 }
 0x14b   : > { %v1646_v9 = vmin.f32 %v1630_v2, 6.0  ;;  %v1195_v10 = vadd.f32 %v1162_v3, %v1074_v15  ;;  %v3556_v33 = vrot.slane %v3112_v39, 2  ;;  %v776_v23 = vmul.f32 %v3628_v26, %v2507_v44 }
 0x14c   : > { %v1464_v22 = vsel %vm821_vm3, %v1462_v30, %v3557_v45  ;;  %v758_v5 = vadd.f32 %v2495_v40, %v742_v32  ;;  %v3129_v56 = vmul.f32 %v2709_v37, %v2507_v44  ;;  %v898_v29 = vmul.f32 %v3628_v26, %v2512_v46 }
 0x14d   : > { %2030 = vmatmul.msk.f32.gmra.mxu2 %vm1662_vm5, %v1646_v9  ;;  %v1316_v42 = vadd.f32 %v1283_v18, %v1195_v10  ;;  %v1585_v4 = vsel %vm943_vm4, %v1583_v17, %v3556_v33  ;;  %v827_v14 = vrot.slane %v776_v23, 1  ;;  %v3139_v34 = vmul.f32 %v2709_v37, %v2512_v46 }
 0x14e   : > { %v3561_v24 = vrot.slane %v3129_v56, 1  ;;  %v949_v54 = vrot.slane %v898_v29, 2  ;;  %v1046_v3 = vmul.f32 %v3629_v12, %v2517_v48  ;;  %v1080_v31 = vmul.f32 %v3629_v12, %v2519_v49 }
 0x14f   : > { %v1376_v2 = vadd.f32 %v1360_v51, %v1316_v42  ;;  %v3560_v15 = vrot.slane %v3139_v34, 2  ;;  %v3149_v30 = vmul.f32 %v2746_v0, %v2519_v49  ;;  %v1201_v18 = vmul.f32 %v3629_v12, %v2521_v50  ;;  %v3630_v51 = vld [vmem:[#allocation10_spill] sm:$0xff] }
 0x150   : > { %v829_v17 = vsel %vm821_vm3, %v827_v14, %v3561_v24  ;;  %v1130_v26 = vrot.slane %v1080_v31, 1  ;;  %v3158_v32 = vmul.f32 %v2746_v0, %v2521_v50  ;;  %v1348_v9 = vmul.f32 %v3630_v51, %v2534_v55  ;;  %v3203_v24 = vld [vmem:[%s2497_s19 + $0x68] sm:$0xff] }
 0x151   : > { %v1497_v10 = vadd.f32 %v1464_v22, %v1376_v2  ;;  %v880_v23 = vadd.f32 %v829_v17, %v758_v5  ;;  %v951_v29 = vsel %vm943_vm4, %v949_v54, %v3560_v15  ;;  %v3558_v42 = vrot.slane %v3149_v30, 1 }
 0x152   : > { %v1251_v12 = vrot.slane %v1201_v18, 2  ;;  %v3559_v33 = vrot.slane %v3158_v32, 2  ;;  %v1382_v14 = vmul.f32 %v3630_v51, %v2547_v60  ;;  %v3171_v31 = vmul.f32 %v2789_v13, %v2547_v60 }
 0x153   : > { %v1618_v45 = vadd.f32 %v1585_v4, %v1497_v10  ;;  %v1002_v22 = vadd.f32 %v951_v29, %v880_v23  ;;  %v1132_v5 = vsel %vm821_vm3, %v1130_v26, %v3558_v42  ;;  %v1503_v54 = vmul.f32 %v2556_v1, %v3630_v51 }
 0x154   : > { %v1253_v2 = vsel %vm943_vm4, %v1251_v12, %v3559_v33  ;;  %v1432_v18 = vrot.slane %v1382_v14, 1  ;;  %v3562_v17 = vrot.slane %v3171_v31, 1  ;;  %v3184_v4 = vmul.f32 %v2556_v1, %v2789_v13 }
 0x155   : > { %v1634_v10 = vmax.f32 %v1618_v45, 0.0  ;;  %v1062_v23 = vadd.f32 %v1046_v3, %v1002_v22  ;;  %v1553_v29 = vrot.slane %v1503_v54, 2  ;;  %v746_v26 = vmul.f32 %v3630_v51, %v2505_v43  ;;  %v1979_v45 = vld [vmem:[%s2497_s19 + $0x60] sm:$0xff] }
 0x156   : > { %v1434_v42 = vsel %vm821_vm3, %v1432_v18, %v3562_v17  ;;  %v3565_v12 = vrot.slane %v3184_v4, 2  ;;  %v782_v14 = vmul.f32 %v3630_v51, %v2507_v44  ;;  %v3196_v33 = vmul.f32 %v2789_v13, %v2507_v44 }
 0x157   : > { %v1650_v3 = vmin.f32 %v1634_v10, 6.0  ;;  %v1183_v22 = vadd.f32 %v1132_v5, %v1062_v23  ;;  %v762_v54 = vadd.f32 %v2495_v40, %v746_v26  ;;  %v904_v15 = vmul.f32 %v3630_v51, %v2512_v46  ;;  %v2005_v23 = vld [vmem:[%s2497_s19 + $0x78] sm:$0xff] }
 0x158   : > { %v1555_v18 = vsel %vm943_vm4, %v1553_v29, %v3565_v12  ;;  %v837_v17 = vrot.slane %v782_v14, 1  ;;  %v3567_v63 = vrot.slane %v3196_v33, 1  ;;  %v3211_v20 = vmul.f32 %v2789_v13, %v2512_v46 }
 0x159   : > { %2034 = vmatmul.msk.f32.gmra.mxu3 %vm1662_vm5, %v1650_v3  ;;  %v1304_v40 = vadd.f32 %v1253_v2, %v1183_v22  ;;  %v959_v5 = vrot.slane %v904_v15, 2  ;;  %v1050_v51 = vmul.f32 %v1979_v45, %v2517_v48  ;;  %v1086_v10 = vmul.f32 %v1979_v45, %v2519_v49 }
 0x15a   : > { %v839_v29 = vsel %vm821_vm3, %v837_v17, %v3567_v63  ;;  %v3571_v26 = vrot.slane %v3211_v20, 2  ;;  %v3223_v14 = vmul.f32 %v3203_v24, %v2519_v49  ;;  %v1207_v12 = vmul.f32 %v1979_v45, %v2521_v50 }
 0x15b   : > { %v1364_v3 = vadd.f32 %v1348_v9, %v1304_v40  ;;  %v884_v2 = vadd.f32 %v839_v29, %v762_v54  ;;  %v1140_v15 = vrot.slane %v1086_v10, 1  ;;  %v3228_v22 = vmul.f32 %v3203_v24, %v2521_v50 }
 0x15c   : > { %v961_v17 = vsel %vm943_vm4, %v959_v5, %v3571_v26  ;;  %v3570_v63 = vrot.slane %v3223_v14, 1  ;;  %v1261_v27 = vrot.slane %v1207_v12, 2  ;;  %v1352_v61 = vmul.f32 %v2005_v23, %v2534_v55  ;;  %v732_v12 = vld [vmem:[%s2497_s19 + $0x88] sm:$0x3] }
 0x15d   : > { %v1485_v45 = vadd.f32 %v1434_v42, %v1364_v3  ;;  %v1006_v9 = vadd.f32 %v961_v17, %v884_v2  ;;  %v3576_v54 = vrot.slane %v3228_v22, 2  ;;  %v1388_v40 = vmul.f32 %v2005_v23, %v2547_v60 }
 0x15e   : > { %v1142_v10 = vsel %vm821_vm3, %v1140_v15, %v3570_v63  ;;  %v3245_v29 = vmul.f32 %v3231_v57, %v2547_v60  ;;  %v1509_v5 = vmul.f32 %v2556_v1, %v2005_v23  ;;  %v3250_v42 = vmul.f32 %v2556_v1, %v3231_v57  ;;  %v2106_v23 = vld [vmem:[%s2497_s19 + $0x80] sm:$0xff] }
 0x15f   : > { %v1606_v3 = vadd.f32 %v1555_v18, %v1485_v45  ;;  %v1066_v2 = vadd.f32 %v1050_v51, %v1006_v9  ;;  %v1263_v17 = vsel %vm943_vm4, %v1261_v27, %v3576_v54  ;;  %v1442_v15 = vrot.slane %v1388_v40, 1  ;;  %v1987_v51 = vld [vmem:[%s2497_s19 + $0xa0] sm:$0x3]  ;;  %v2013_v45 = vld [vmem:[%s2497_s19 + $0xb8] sm:$0x3] }
 0x160   : > { %3631 = vst [vmem:[#allocation11_spill] sm:$0xff] %v3245_v29  ;;  %v3578_v63 = vrot.slane %v3245_v29, 1  ;;  %v1563_v26 = vrot.slane %v1509_v5, 2  ;;  %v3580_v25 = vrot.slane %v3250_v42, 2  ;;  %v751_v35 = vmul.f32 %v2106_v23, %v2505_v43  ;;  %v3267_v27 = vld [vmem:[%s3507_s4] ss:$0 sm:$0xff] }
 0x161   : > { %v1622_v53 = vmax.f32 %v1606_v3, 0.0  ;;  %v1187_v1 = vadd.f32 %v1142_v10, %v1066_v2  ;;  %v790_v47 = vmul.f32 %v2507_v44, %v732_v12  ;;  %v912_v18 = vmul.f32 %v2512_v46, %v732_v12 }
 0x162   : > { %v767_v9 = vadd.f32 %v3267_v27, %v751_v35  ;;  %v1444_v10 = vsel %vm821_vm3, %v1442_v15, %v3578_v63  ;;  %v1094_v12 = vmul.f32 %v1987_v51, %v2519_v49  ;;  %v1215_v2 = vmul.f32 %v1987_v51, %v2521_v50  ;;  %v2108_v51 = vld [vmem:[%s2497_s19 + $0x98] sm:$0xff] }
 0x163   : > { %v1638_v40 = vmin.f32 %v1622_v53, 6.0  ;;  %v1308_v5 = vadd.f32 %v1263_v17, %v1187_v1  ;;  %v850_v23 = vrot.slane %v790_v47, 1  ;;  %v972_v3 = vrot.slane %v912_v18, 2 }
 0x164   : > { %v1396_v54 = vmul.f32 %v2013_v45, %v2547_v60  ;;  %v1565_v47 = vsel %vm943_vm4, %v1563_v26, %v3580_v25  ;;  %v3632_v53 = vrot.slane %v2988_v21, 1  ;;  %v3633_v15 = vrot.slane %v3002_v62, 2 }
 0x165   : > { %2022 = vmatmul.msk.f32.gmra.mxu0 %vm1662_vm5, %v1638_v40  ;;  %v1368_v35 = vadd.f32 %v1352_v61, %v1308_v5  ;;  %v1055_v63 = vmul.f32 %v2108_v51, %v2517_v48  ;;  %v1153_v29 = vrot.slane %v1094_v12, 1  ;;  %v3292_v61 = vld [vmem:[%s3506_s3 + $0x8] ss:$0 sm:$0xff]  ;;  %v1274_v21 = vrot.slane %v1215_v2, 2 }
 0x166   : > { %v851_v17 = vsel %vm821_vm3, %v3632_v53, %v850_v23  ;;  %v973_v1 = vsel %vm943_vm4, %v3633_v15, %v972_v3  ;;  %v1517_v26 = vmul.f32 %v3292_v61, %v2013_v45  ;;  %v755_v62 = vmul.f32 %v2630_v38, %v2505_v43 }
 0x167   : > { %v889_v18 = vadd.f32 %v851_v17, %v767_v9  ;;  %v1489_v40 = vadd.f32 %v1444_v10, %v1368_v35  ;;  %v796_v5 = vmul.f32 %v2507_v44, %v738_v6  ;;  %v1993_v9 = vld [vmem:[%s2497_s19 + $0xd0] sm:$0x3]  ;;  %v1357_v3 = vmul.f32 %v2630_v38, %v2534_v55 }
 0x168   : > { %v1455_v12 = vrot.slane %v1396_v54, 1  ;;  %v3634_v17 = vrot.slane %v3014_v59, 1  ;;  %v771_v45 = vadd.f32 %v3267_v27, %v755_v62  ;;  %v1576_v35 = vrot.slane %v1517_v26, 2 }
 0x169   : > { %v1011_v23 = vadd.f32 %v973_v1, %v889_v18  ;;  %v1610_v53 = vadd.f32 %v1565_v47, %v1489_v40  ;;  %v860_v10 = vrot.slane %v796_v5, 1  ;;  %v918_v51 = vmul.f32 %v2512_v46, %v738_v6  ;;  %v2019_v1 = vld [vmem:[%s2497_s19 + $0xe8] sm:$0x3] }
 0x16a   : > { %v1154_v15 = vsel %vm821_vm3, %v3634_v17, %v1153_v29  ;;  %v1100_v25 = vmul.f32 %v1993_v9, %v2519_v49  ;;  %v3635_v38 = vrot.slane %v3024_v36, 2  ;;  %v3636_v59 = vrot.slane %v3057_v19, 1 }
 0x16b   : > { %v1071_v2 = vadd.f32 %v1055_v63, %v1011_v23  ;;  %v1626_v18 = vmax.f32 %v1610_v53, 0.0  ;;  %v1221_v47 = vmul.f32 %v1993_v9, %v2521_v50  ;;  %v982_v26 = vrot.slane %v918_v51, 2 }
 0x16c   : > { %v1275_v54 = vsel %vm943_vm4, %v3635_v38, %v1274_v21  ;;  %v861_v29 = vsel %vm821_vm3, %v3636_v59, %v860_v10  ;;  %v1163_v62 = vrot.slane %v1100_v25, 1  ;;  %v1059_v5 = vmul.f32 %v2655_v8, %v2517_v48  ;;  %v720_v21 = vld [vmem:[%s2497_s19 + $0x28] sm:$0x3] }
 0x16d   : > { %v1192_v40 = vadd.f32 %v1154_v15, %v1071_v2  ;;  %v893_v63 = vadd.f32 %v861_v29, %v771_v45  ;;  %v1642_v6 = vmin.f32 %v1626_v18, 6.0  ;;  %v1284_v23 = vrot.slane %v1221_v47, 2 }
 0x16e   : > { %v1402_v36 = vmul.f32 %v2019_v1, %v2547_v60  ;;  %v3637_v19 = vrot.slane %v3037_v11, 1  ;;  %v3638_v9 = vrot.slane %v3070_v28, 2  ;;  %v743_v25 = vmul.f32 %v2709_v37, %v2505_v43 }
 0x16f   : > { %v1313_v53 = vadd.f32 %v1275_v54, %v1192_v40  ;;  %2026 = vmatmul.msk.f32.gmra.mxu1 %vm1662_vm5, %v1642_v6  ;;  %v3639_v8 = vrot.slane %v3043_v52, 2  ;;  %v1361_v2 = vmul.f32 %v3088_v7, %v2534_v55  ;;  %v1523_v11 = vmul.f32 %v3292_v61, %v2019_v1  ;;  %v2001_v54 = vld [vmem:[%s2497_s19 + $0x58] sm:$0x3] }
 0x170   : > { %v1456_v17 = vsel %vm821_vm3, %v3637_v19, %v1455_v12  ;;  %v983_v15 = vsel %vm943_vm4, %v3638_v9, %v982_v26  ;;  %v1975_v12 = vld [vmem:[%s2497_s19 + $0x40] sm:$0x3]  ;;  %v3640_v28 = vrot.slane %v3083_v58, 1  ;;  %v778_v37 = vmul.f32 %v2507_v44, %v720_v21  ;;  %v726_v9 = vld [vmem:[%s2497_s19 + $0x58] sm:$0x3] }
 0x171   : > { %v1577_v45 = vsel %vm943_vm4, %v3639_v8, %v1576_v35  ;;  %v1015_v10 = vadd.f32 %v983_v15, %v893_v63  ;;  %v1373_v51 = vadd.f32 %v1357_v3, %v1313_v53  ;;  %v900_v38 = vmul.f32 %v2512_v46, %v720_v21 }
 0x172   : > { %v1164_v18 = vsel %vm821_vm3, %v3640_v28, %v1163_v62  ;;  %v3641_v35 = vrot.slane %v3097_v16, 2  ;;  %v1465_v29 = vrot.slane %v1402_v36, 1  ;;  %v759_v7 = vadd.f32 %v3267_v27, %v743_v25  ;;  %v1981_v28 = vld [vmem:[%s2497_s19 + $0x70] sm:$0x3] }
 0x173   : > { %v1075_v52 = vadd.f32 %v1059_v5, %v1015_v10  ;;  %v1494_v1 = vadd.f32 %v1456_v17, %v1373_v51  ;;  %v830_v3 = vrot.slane %v778_v37, 1  ;;  %v952_v47 = vrot.slane %v900_v38, 2 }
 0x174   : > { %v1285_v59 = vsel %vm943_vm4, %v3641_v35, %v1284_v23  ;;  %v1082_v58 = vmul.f32 %v1975_v12, %v2519_v49  ;;  %v1586_v63 = vrot.slane %v1523_v11, 2  ;;  %v1203_v26 = vmul.f32 %v1975_v12, %v2521_v50 }
 0x175   : > { %v1196_v40 = vadd.f32 %v1164_v18, %v1075_v52  ;;  %v1384_v62 = vmul.f32 %v2001_v54, %v2547_v60  ;;  %v1615_v6 = vadd.f32 %v1577_v45, %v1494_v1  ;;  %v3642_v16 = vrot.slane %v3129_v56, 1 }
 0x176   : > { %v3643_v23 = vrot.slane %v3139_v34, 2  ;;  %v1133_v21 = vrot.slane %v1082_v58, 1  ;;  %v1047_v17 = vmul.f32 %v2746_v0, %v2517_v48  ;;  %v3644_v25 = vrot.slane %v3107_v41, 1 }
 0x177   : > { %v831_v5 = vsel %vm821_vm3, %v3642_v16, %v830_v3  ;;  %v1317_v53 = vadd.f32 %v1285_v59, %v1196_v40  ;;  %v1631_v15 = vmax.f32 %v1615_v6, 0.0  ;;  %v1254_v56 = vrot.slane %v1203_v26, 2 }
 0x178   : > { %v953_v36 = vsel %vm943_vm4, %v3643_v23, %v952_v47  ;;  %v881_v19 = vadd.f32 %v831_v5, %v759_v7  ;;  %v1466_v8 = vsel %vm821_vm3, %v3644_v25, %v1465_v29  ;;  %v747_v45 = vmul.f32 %v2789_v13, %v2505_v43 }
 0x179   : > { %v1377_v10 = vadd.f32 %v1361_v2, %v1317_v53  ;;  %v3645_v34 = vrot.slane %v3112_v39, 2  ;;  %v1435_v51 = vrot.slane %v1384_v62, 1  ;;  %v1647_v18 = vmin.f32 %v1631_v15, 6.0 }
 0x17a   : > { %v1003_v12 = vadd.f32 %v953_v36, %v881_v19  ;;  %v3646_v0 = vrot.slane %v3149_v30, 1  ;;  %v1505_v41 = vmul.f32 %v3292_v61, %v2001_v54  ;;  %v784_v38 = vmul.f32 %v2507_v44, %v726_v9 }
 0x17b   : > { %v1587_v11 = vsel %vm943_vm4, %v3645_v34, %v1586_v63  ;;  %v1498_v52 = vadd.f32 %v1466_v8, %v1377_v10  ;;  %v763_v2 = vadd.f32 %v3267_v27, %v747_v45  ;;  %v906_v39 = vmul.f32 %v2512_v46, %v726_v9  ;;  %2031 = vmatmul.msk.f32.gmra.mxu2 %vm1662_vm5, %v1647_v18  ;;  %v2007_v27 = vld [vmem:[%s2497_s19 + $0x88] sm:$0x3] }
 0x17c   : > { %v1134_v37 = vsel %vm821_vm3, %v3646_v0, %v1133_v21  ;;  %v1063_v43 = vadd.f32 %v1047_v17, %v1003_v12  ;;  %v3647_v35 = vrot.slane %v3158_v32, 2  ;;  %v840_v30 = vrot.slane %v784_v38, 1 }
 0x17d   : > { %v1088_v29 = vmul.f32 %v1981_v28, %v2519_v49  ;;  %v1209_v7 = vmul.f32 %v1981_v28, %v2521_v50  ;;  %v1619_v54 = vadd.f32 %v1587_v11, %v1498_v52  ;;  %v1349_v44 = vmul.f32 %v2789_v13, %v2534_v55  ;;  %v1790_v52 = vld [vmem:[%s3414_s20 + $0x60] sm:$0xff] }
 0x17e   : > { %v1255_v59 = vsel %vm943_vm4, %v3647_v35, %v1254_v56  ;;  %v1184_v1 = vadd.f32 %v1134_v37, %v1063_v43  ;;  %v962_v3 = vrot.slane %v906_v39, 2  ;;  %v1556_v47 = vrot.slane %v1505_v41, 2  ;;  %v3654_v56 = vld [vmem:[#allocation11_spill] sm:$0xff]  ;;  %v1778_v35 = vld [vmem:[%s3414_s20] sm:$0xff] }
 0x17f   : > { %v3648_v46 = vrot.slane %v3196_v33, 1  ;;  %v1051_v32 = vmul.f32 %v3203_v24, %v2517_v48  ;;  %v1143_v40 = vrot.slane %v1088_v29, 1  ;;  %v1635_v63 = vmax.f32 %v1619_v54, 0.0 }
 0x180   : > { %v1305_v49 = vadd.f32 %v1255_v59, %v1184_v1  ;;  %v3649_v26 = vrot.slane %v3211_v20, 2  ;;  %v3650_v13 = vrot.slane %v3171_v31, 1  ;;  %v1264_v16 = vrot.slane %v1209_v7, 2  ;;  %v1782_v7 = vld [vmem:[%s3414_s20 + $0x20] sm:$0xff] }
 0x181   : > { %v841_v58 = vsel %vm821_vm3, %v3648_v46, %v840_v30  ;;  %v1390_v33 = vmul.f32 %v2007_v27, %v2547_v60  ;;  %v1651_v5 = vmin.f32 %v1635_v63, 6.0  ;;  %v3651_v24 = vrot.slane %v3184_v4, 2  ;;  %v1779_v63 = vld [vmem:[%s3414_s20 + $0x8] sm:$0xff] }
 0x182   : > { %v885_v50 = vadd.f32 %v841_v58, %v763_v2  ;;  %v963_v62 = vsel %vm943_vm4, %v3649_v26, %v962_v3  ;;  %v1436_v6 = vsel %vm821_vm3, %v3650_v13, %v1435_v51  ;;  %v1365_v23 = vadd.f32 %v1349_v44, %v1305_v49  ;;  %v1787_v3 = vld [vmem:[%s3414_s20 + $0x48] sm:$0xff] }
 0x183   : > { %v1557_v36 = vsel %vm943_vm4, %v3651_v24, %v1556_v47  ;;  %v3652_v21 = vrot.slane %v3223_v14, 1  ;;  %v1511_v53 = vmul.f32 %v3292_v61, %v2007_v27  ;;  %2035 = vmatmul.msk.f32.gmra.mxu3 %vm1662_vm5, %v1651_v5  ;;  %v3653_v60 = vrot.slane %v3228_v22, 2  ;;  %v3411_v61 = vld [vmem:[%s3509_s6] ss:$0 sm:$0xff]  ;;  %v1791_v58 = vld [vmem:[%s3414_s20 + $0x68] sm:$0xff]  ;;  %v1788_v5 = vld [vmem:[%s3414_s20 + $0x50] sm:$0xff] }
 0x184   : > { %v1007_v48 = vadd.f32 %v963_v62, %v885_v50  ;;  %v1486_v31 = vadd.f32 %v1436_v6, %v1365_v23  ;;  %v1445_v9 = vrot.slane %v1390_v33, 1  ;;  %v1353_v25 = vmul.f32 %v3231_v57, %v2534_v55  ;;  %v1752_v55 = vpop.f32.mrf.mxu2  ;;  %v1786_v57 = vld [vmem:[%s3414_s20 + $0x40] sm:$0xff]  ;;  %v1783_v13 = vld [vmem:[%s3414_s20 + $0x28] sm:$0xff] }
 0x185   : > { %v1144_v20 = vsel %vm821_vm3, %v3652_v21, %v1143_v40  ;;  %v1265_v17 = vsel %vm943_vm4, %v3653_v60, %v1264_v16  ;;  %v1566_v14 = vrot.slane %v1511_v53, 2  ;;  %v3655_v45 = vrot.slane %v3654_v56, 1 }
 0x186   : > { %v1067_v19 = vadd.f32 %v1051_v32, %v1007_v48  ;;  %v1607_v15 = vadd.f32 %v1557_v36, %v1486_v31  ;;  %v3656_v12 = vrot.slane %v3250_v42, 2  ;;  %v1753_v28 = vadd.f32 %v3411_v61, %v1752_v55  ;;  %v1792_v36 = vld [vmem:[%s3414_s20 + $0x70] sm:$0xff] }
 0x187   : > { %v1446_v10 = vsel %vm821_vm3, %v3655_v45, %v1445_v9  ;;  %v1780_v31 = vld [vmem:[%s3414_s20 + $0x10] sm:$0xff]  ;;  %v1793_v45 = vld [vmem:[%s3414_s20 + $0x78] sm:$0xff] }
 0x188   : > { %v1188_v4 = vadd.f32 %v1144_v20, %v1067_v19  ;;  %v1623_v8 = vmax.f32 %v1607_v15, 0.0  ;;  %v1567_v51 = vsel %vm943_vm4, %v3656_v12, %v1566_v14  ;;  %v1802_v0 = vadd.f32 %v1786_v57, %v1753_v28  ;;  %v1784_v9 = vld [vmem:[%s3414_s20 + $0x30] sm:$0xff]  ;;  %v1789_v14 = vld [vmem:[%s3414_s20 + $0x58] sm:$0xff] }
 0x189   : > { %v1785_v28 = vld [vmem:[%s3414_s20 + $0x38] sm:$0xff] }
 0x18a   : > { %v1309_v22 = vadd.f32 %v1265_v17, %v1188_v4  ;;  %v1639_v34 = vmin.f32 %v1623_v8, 6.0  ;;  %1819 = vst.msk [vmem:[%s2232_s18 + $0x40] sm:$0xff] %vm1810_vm6, %v1802_v0 }
 0x18b   : > { %v1764_v42 = vpop.f32.mrf.mxu3 }
 0x18c   : > { %v1369_v11 = vadd.f32 %v1353_v25, %v1309_v22  ;;  %2023 = vmatmul.msk.f32.gmra.mxu0 %vm1662_vm5, %v1639_v34  ;;  %v1765_v43 = vadd.f32 %v3411_v61, %v1764_v42 }
 0x18e   : > { %v1490_v18 = vadd.f32 %v1446_v10, %v1369_v11  ;;  %v1806_v2 = vadd.f32 %v1790_v52, %v1765_v43  ;;  %v1781_v11 = vld [vmem:[%s3414_s20 + $0x18] sm:$0xff] }
 0x18f   : > { %v1728_v39 = vpop.f32.mrf.mxu0 }
 0x190   : > { %v1611_v37 = vadd.f32 %v1567_v51, %v1490_v18  ;;  %v1729_v59 = vadd.f32 %v3411_v61, %v1728_v39  ;;  %1823 = vst.msk [vmem:[%s2232_s18 + $0x60] sm:$0xff] %vm1810_vm6, %v1806_v2 }
 0x192   : > { %v1627_v41 = vmax.f32 %v1611_v37, 0.0  ;;  %v1794_v30 = vadd.f32 %v1778_v35, %v1729_v59 }
 0x194   : > { %v1643_v38 = vmin.f32 %v1627_v41, 6.0  ;;  %1811 = vst.msk [vmem:[%s2232_s18] sm:$0xff] %vm1810_vm6, %v1794_v30 }
 0x196   : > { %2027 = vmatmul.msk.f32.gmra.mxu1 %vm1662_vm5, %v1643_v38 }
 0x19d   : > { %v1740_v29 = vpop.f32.mrf.mxu1 }
 0x19e   : > { %v1741_v54 = vadd.f32 %v3411_v61, %v1740_v29 }
 0x1a0   : > { %v1798_v1 = vadd.f32 %v1782_v7, %v1741_v54 }
 0x1a2   : > { %1815 = vst.msk [vmem:[%s2232_s18 + $0x20] sm:$0xff] %vm1810_vm6, %v1798_v1 }
 0x1ae   : > { %v1755_v44 = vpop.f32.mrf.mxu2 }
 0x1af   : > { %v1756_v27 = vadd.f32 %v3411_v61, %v1755_v44 }
 0x1b1   : > { %v1803_v47 = vadd.f32 %v1787_v3, %v1756_v27 }
 0x1b3   : > { %1820 = vst.msk [vmem:[%s2232_s18 + $0x48] sm:$0xff] %vm1810_vm6, %v1803_v47 }
 0x1b5   : > { %v1767_v46 = vpop.f32.mrf.mxu3 }
 0x1b6   : > { %v1768_v32 = vadd.f32 %v3411_v61, %v1767_v46 }
 0x1b8   : > { %v1807_v49 = vadd.f32 %v1791_v58, %v1768_v32 }
 0x1ba   : > { %v1731_v40 = vpop.f32.mrf.mxu0  ;;  %1824 = vst.msk [vmem:[%s2232_s18 + $0x68] sm:$0xff] %vm1810_vm6, %v1807_v49 }
 0x1bb   : > { %v1732_v50 = vadd.f32 %v3411_v61, %v1731_v40 }
 0x1bd   : > { %v1795_v26 = vadd.f32 %v1779_v63, %v1732_v50 }
 0x1bf   : > { %1812 = vst.msk [vmem:[%s2232_s18 + $0x8] sm:$0xff] %vm1810_vm6, %v1795_v26 }
 0x1c3   : > { %v1743_v62 = vpop.f32.mrf.mxu1 }
 0x1c4   : > { %v1744_v6 = vadd.f32 %v3411_v61, %v1743_v62 }
 0x1c6   : > { %v1799_v16 = vadd.f32 %v1783_v13, %v1744_v6 }
 0x1c8   : > { %1816 = vst.msk [vmem:[%s2232_s18 + $0x28] sm:$0xff] %vm1810_vm6, %v1799_v16 }
 0x1d0   : > { %v1758_v33 = vpop.f32.mrf.mxu2 }
 0x1d1   : > { %v1759_v23 = vadd.f32 %v3411_v61, %v1758_v33 }
 0x1d3   : > { %v1804_v48 = vadd.f32 %v1788_v5, %v1759_v23 }
 0x1d5   : > { %1821 = vst.msk [vmem:[%s2232_s18 + $0x50] sm:$0xff] %vm1810_vm6, %v1804_v48 }
 0x1dc   : > { %v1770_v24 = vpop.f32.mrf.mxu3 }
 0x1dd   : > { %v1771_v21 = vadd.f32 %v3411_v61, %v1770_v24 }
 0x1df   : > { %v1808_v20 = vadd.f32 %v1792_v36, %v1771_v21 }
 0x1e1   : > { %1825 = vst.msk [vmem:[%s2232_s18 + $0x70] sm:$0xff] %vm1810_vm6, %v1808_v20 }
 0x1e2   : > { %v1734_v53 = vpop.f32.mrf.mxu0 }
 0x1e3   : > { %v1735_v19 = vadd.f32 %v3411_v61, %v1734_v53 }
 0x1e5   : > { %v1796_v60 = vadd.f32 %v1780_v31, %v1735_v19 }
 0x1e7   : > { %1813 = vst.msk [vmem:[%s2232_s18 + $0x10] sm:$0xff] %vm1810_vm6, %v1796_v60 }
 0x1ec   : > { %v1746_v17 = vpop.f32.mrf.mxu1 }
 0x1ed   : > { %v1747_v15 = vadd.f32 %v3411_v61, %v1746_v17 }
 0x1ef   : > { %v1800_v4 = vadd.f32 %v1784_v9, %v1747_v15 }
 0x1f1   : > { %1817 = vst.msk [vmem:[%s2232_s18 + $0x30] sm:$0xff] %vm1810_vm6, %v1800_v4 }
 0x1fe   : > { %v1761_v25 = vpop.f32.mrf.mxu2 }
 0x1ff   : > { %v1762_v8 = vadd.f32 %v3411_v61, %v1761_v25 }
 0x201   : > { %v1805_v22 = vadd.f32 %v1789_v14, %v1762_v8 }
 0x203   : > { %1822 = vst.msk [vmem:[%s2232_s18 + $0x58] sm:$0xff] %vm1810_vm6, %v1805_v22 }
 0x206   : > { %v1773_v56 = vpop.f32.mrf.mxu3 }
 0x207   : > { %v1774_v10 = vadd.f32 %v3411_v61, %v1773_v56 }
 0x209   : > { %v1737_v34 = vpop.f32.mrf.mxu0  ;;  %v1809_v57 = vadd.f32 %v1793_v45, %v1774_v10 }
 0x20a   : > { %v1738_v55 = vadd.f32 %v3411_v61, %v1737_v34 }
 0x20b   : > { %1826 = vst.msk [vmem:[%s2232_s18 + $0x78] sm:$0xff] %vm1810_vm6, %v1809_v57 }
 0x20c   : > { %v1797_v12 = vadd.f32 %v1781_v11, %v1738_v55 }
 0x20e   : > { %1814 = vst.msk [vmem:[%s2232_s18 + $0x18] sm:$0xff] %vm1810_vm6, %v1797_v12 }
 0x213   : > { %v1749_v51 = vpop.f32.mrf.mxu1 }
 0x214   : > { %v1750_v18 = vadd.f32 %v3411_v61, %v1749_v51 }
 0x216   : > { %v1801_v0 = vadd.f32 %v1785_v28, %v1750_v18 }
 0x218   : > { %1818 = vst.msk [vmem:[%s2232_s18 + $0x38] sm:$0xff] %vm1810_vm6, %v1801_v0 }
 0x219 PF: > { %s17_s28 = sadd.s32 1, %s2148_s28   ;;  %s3657_s24 = smov %s2140_s26 }
 0x21a   : > { %p14_p8 = scmp.ge.s32.totalorder %s17_s28, 6   ;;  %s3658_s25 = smov %s2144_s27 }
 0x21b   : > { %s3659_s26 = smov %s3662_s29  ;;  %s3660_s27 = smov %s3666_s30 }
 0x21c   :  { %16 = sbr.rel (!%p14_p8) target bundleno = 3 (0x3), region = 87 }

</bundles_post_ra>
